<compile_context>
chip_gen: v5e
topology: v5e:2x2
jax: 0.10.0
libtpu: 0.0.40
codegen_flags: <defaults>
</compile_context>

<pallas_src>
import jax
import jax.numpy as jnp
from jax.experimental import pallas as pl
from jax.experimental.pallas import tpu as pltpu

# Logical dims from the PyTorch module.
D_IN, H1, H2, H3, D_OUT = 330, 500, 500, 200, 3


def _round_up(n, m):
    return ((n + m - 1) // m) * m


# Output dims lane-aligned to 128; the first contraction dim stays at the
# logical 330 (full-array-dim blocks are exempt from the (8,128) rule).
H1_P = _round_up(H1, 128)        # 512
H2_P = _round_up(H2, 128)        # 512
H3_P = _round_up(H3, 128)        # 256
D_OUT_P = _round_up(D_OUT, 128)  # 128

PADDED_DIMS = [(D_IN, H1_P), (H1_P, H2_P), (H2_P, H3_P), (H3_P, D_OUT_P)]


def mlp_kernel(x_ref, w1_ref, b1_ref, w2_ref, b2_ref,
               w5_ref, b5_ref, w7_ref, b7_ref, out_ref):
    # fc1 + ReLU (dropout is the identity in eval mode). Cast input to bf16
    # in-kernel so the wrapper never materializes a padded/cast copy.
    x = x_ref[...].astype(jnp.bfloat16)
    h = jnp.dot(x, w1_ref[...], preferred_element_type=jnp.float32)
    h = jnp.maximum(h + b1_ref[...], 0.0)
    # fc2 + ReLU
    h = jnp.dot(h.astype(jnp.bfloat16), w2_ref[...],
                preferred_element_type=jnp.float32)
    h = jnp.maximum(h + b2_ref[...], 0.0)
    # fc5 + ReLU  (padded output lanes stay exactly zero: zero weights + bias)
    h = jnp.dot(h.astype(jnp.bfloat16), w5_ref[...],
                preferred_element_type=jnp.float32)
    h = jnp.maximum(h + b5_ref[...], 0.0)
    # fc7 (no activation)
    logits = jnp.dot(h.astype(jnp.bfloat16), w7_ref[...],
                     preferred_element_type=jnp.float32)
    logits = logits + b7_ref[...]
    # Mask padded logit lanes so they don't perturb the log-sum-exp.
    col = jax.lax.broadcasted_iota(jnp.int32, logits.shape, 1)
    logits = jnp.where(col < D_OUT, logits, jnp.float32(-1e30))
    # log_softmax over the feature axis.
    m = jnp.max(logits, axis=-1, keepdims=True)
    shifted = logits - m
    lse = jnp.log(jnp.sum(jnp.exp(shifted), axis=-1, keepdims=True))
    out_ref[...] = shifted - lse


def net_forward(x, padded_params, *, batch_tile=256):
    """x: (B, 330) float32.  padded_params: bf16 padded weights, f32 biases.
    Returns (B, 3) float32 log-probabilities."""
    (w1, b1), (w2, b2), (w5, b5), (w7, b7) = padded_params
    B = x.shape[0]

    # Batch tile: multiple of 8 (sublane), capped at batch_tile. For B >= 16
    # force at least 2 grid steps so the "parallel" axis can shard across
    # v7x's two TensorCores; large default tile amortizes per-step overhead.
    if B >= 16:
        TB = min(batch_tile, _round_up((B + 1) // 2, 8))
    else:
        TB = min(batch_tile, _round_up(B, 8))
    B_pad = _round_up(B, TB)
    n_tiles = B_pad // TB

    # Only the batch is padded (single fused op, skipped when not needed);
    # the 330-wide feature dim is passed through untouched.
    x_p = x if B_pad == B else jnp.pad(x, ((0, B_pad - B), (0, 0)))

    def const_spec(shape):
        # Weights/biases: constant block index -> fetched once, VMEM-resident
        # across all batch tiles.
        return pl.BlockSpec(shape, lambda b: (0, 0))

    weight_bytes = sum(w.size * w.dtype.itemsize + bb.size * bb.dtype.itemsize
                       for (w, bb) in padded_params)
    flops = 2 * B_pad * sum(k * n for k, n in PADDED_DIMS)
    bytes_accessed = (weight_bytes
                      + x_p.size * x_p.dtype.itemsize
                      + B_pad * D_OUT_P * 4)
    cost = pl.CostEstimate(flops=flops,
                           transcendentals=B_pad * D_OUT_P,
                           bytes_accessed=bytes_accessed)

    out_p = pl.pallas_call(
        mlp_kernel,
        out_shape=jax.ShapeDtypeStruct((B_pad, D_OUT_P), jnp.float32),
        grid=(n_tiles,),
        in_specs=[
            pl.BlockSpec((TB, D_IN), lambda b: (b, 0)),
            const_spec((D_IN, H1_P)), const_spec((1, H1_P)),
            const_spec((H1_P, H2_P)), const_spec((1, H2_P)),
            const_spec((H2_P, H3_P)), const_spec((1, H3_P)),
            const_spec((H3_P, D_OUT_P)), const_spec((1, D_OUT_P)),
        ],
        out_specs=pl.BlockSpec((TB, D_OUT_P), lambda b: (b, 0)),
        compiler_params=pltpu.CompilerParams(
            dimension_semantics=("parallel",),
            vmem_limit_bytes=32 * 1024 * 1024),
        cost_estimate=cost,
    )(x_p, w1, b1, w2, b2, w5, b5, w7, b7)

    return out_p[:B, :D_OUT]


def init_params(key):
    """Deterministic init mimicking nn.Linear's U(-1/sqrt(fan_in), 1/sqrt(fan_in)).
    Weights stored transposed as (in_features, out_features), float32 (logical)."""
    params = []
    dims = [(D_IN, H1), (H1, H2), (H2, H3), (H3, D_OUT)]
    for fan_in, fan_out in dims:
        key, kw, kb = jax.random.split(key, 3)
        bound = 1.0 / jnp.sqrt(jnp.float32(fan_in))
        w = jax.random.uniform(kw, (fan_in, fan_out), jnp.float32, -bound, bound)
        b = jax.random.uniform(kb, (fan_out,), jnp.float32, -bound, bound)
        params.append((w, b))
    return params


def pad_params(params):
    """Zero-pad output dims (and where needed K dims) to the kernel layout;
    weights -> bf16, biases -> f32 shaped (1, N)."""
    padded = []
    for (w, b), (kp, npad) in zip(params, PADDED_DIMS):
        w_p = jnp.zeros((kp, npad), jnp.bfloat16)
        w_p = w_p.at[:w.shape[0], :w.shape[1]].set(w.astype(jnp.bfloat16))
        b_p = jnp.zeros((1, npad), jnp.float32)
        b_p = b_p.at[0, :b.shape[-1]].set(b.reshape(-1))
        padded.append((w_p, b_p))
    return padded


def reference_forward(x, params):
    """Pure-JAX reference mirroring the kernel's bf16 rounding (f32 accumulation)."""
    h = x
    for i, (w, b) in enumerate(params):
        w_bf = w.astype(jnp.bfloat16).astype(jnp.float32)
        h_bf = h.astype(jnp.bfloat16).astype(jnp.float32)
        h = h_bf @ w_bf + b
        if i < len(params) - 1:
            h = jnp.maximum(h, 0.0)
    return jax.nn.log_softmax(h, axis=1)


if __name__ == "__main__":
    key = jax.random.PRNGKey(0)
    key, kx = jax.random.split(key)
    params = init_params(key)           # logical f32 params (PyTorch-like)
    padded_params = pad_params(params)  # bf16, kernel-layout

    # Small serving-style batch (single-tile grid).
    B = 8
    x = jax.random.normal(kx, (B, D_IN), jnp.float32)
    out = jax.block_until_ready(net_forward(x, padded_params))
    ref = reference_forward(x, params)
    assert out.shape == (B, D_OUT)
    assert jnp.allclose(out, ref, atol=2e-3, rtol=2e-3), "mismatch vs reference (B=8)"

    # Also exercise batch padding + the 2-step parallel grid path.
    key, kx2 = jax.random.split(key)
    B2 = 50
    x2 = jax.random.normal(kx2, (B2, D_IN), jnp.float32)
    out2 = jax.block_until_ready(net_forward(x2, padded_params))
    ref2 = reference_forward(x2, params)
    assert out2.shape == (B2, D_OUT)
    assert jnp.allclose(out2, ref2, atol=2e-3, rtol=2e-3), "mismatch vs reference (B=50)"

    print("KERNEL_OK")
</pallas_src>

<mosaic_0001>
module attributes {stable_mosaic.version = 11 : i64} {
  func.func @mlp_kernel(%arg0: i32, %arg1: memref<8x330xf32, #tpu.memory_space<vmem>>, %arg2: memref<330x512xbf16, #tpu.memory_space<vmem>>, %arg3: memref<1x512xf32, #tpu.memory_space<vmem>>, %arg4: memref<512x512xbf16, #tpu.memory_space<vmem>>, %arg5: memref<1x512xf32, #tpu.memory_space<vmem>>, %arg6: memref<512x256xbf16, #tpu.memory_space<vmem>>, %arg7: memref<1x256xf32, #tpu.memory_space<vmem>>, %arg8: memref<256x128xbf16, #tpu.memory_space<vmem>>, %arg9: memref<1x128xf32, #tpu.memory_space<vmem>>, %arg10: memref<8x128xf32, #tpu.memory_space<vmem>>) attributes {dimension_semantics = [#tpu.dimension_semantics<parallel>], iteration_bounds = array<i64: 1>, scalar_prefetch = 0 : i64, scratch_operands = 0 : i64, tpu.core_type = #tpu.core_type<tc>, window_params = [{transform_indices = @transform_0, window_bounds = array<i64: 8, 330>}, {pipeline_mode = #tpu.pipeline_mode<synchronous>, transform_indices = @transform_1, window_bounds = array<i64: 330, 512>}, {pipeline_mode = #tpu.pipeline_mode<synchronous>, transform_indices = @transform_2, window_bounds = array<i64: 1, 512>}, {pipeline_mode = #tpu.pipeline_mode<synchronous>, transform_indices = @transform_3, window_bounds = array<i64: 512, 512>}, {pipeline_mode = #tpu.pipeline_mode<synchronous>, transform_indices = @transform_4, window_bounds = array<i64: 1, 512>}, {pipeline_mode = #tpu.pipeline_mode<synchronous>, transform_indices = @transform_5, window_bounds = array<i64: 512, 256>}, {pipeline_mode = #tpu.pipeline_mode<synchronous>, transform_indices = @transform_6, window_bounds = array<i64: 1, 256>}, {pipeline_mode = #tpu.pipeline_mode<synchronous>, transform_indices = @transform_7, window_bounds = array<i64: 256, 128>}, {pipeline_mode = #tpu.pipeline_mode<synchronous>, transform_indices = @transform_8, window_bounds = array<i64: 1, 128>}, {transform_indices = @transform_9, window_bounds = array<i64: 8, 128>}]} {
    %c0 = arith.constant 0 : index
    %c0_0 = arith.constant 0 : index
    %0 = vector.load %arg1[%c0, %c0_0] : memref<8x330xf32, #tpu.memory_space<vmem>>, vector<8x330xf32>
    %1 = arith.truncf %0 : vector<8x330xf32> to vector<8x330xbf16>
    %c0_1 = arith.constant 0 : index
    %c0_2 = arith.constant 0 : index
    %2 = vector.load %arg2[%c0_1, %c0_2] : memref<330x512xbf16, #tpu.memory_space<vmem>>, vector<330x512xbf16>
    %cst = arith.constant dense<0.000000e+00> : vector<8x512xf32>
    %3 = tpu.matmul %1, %2, %cst {dimension_numbers = #tpu.dot_dimension_numbers<[1], [0], [0], [1], [0, 0, 1, 1], [], []>} : vector<8x330xbf16>, vector<330x512xbf16>, vector<8x512xf32> -> vector<8x512xf32>
    %c0_3 = arith.constant 0 : index
    %c0_4 = arith.constant 0 : index
    %4 = vector.load %arg3[%c0_3, %c0_4] : memref<1x512xf32, #tpu.memory_space<vmem>>, vector<1x512xf32>
    %5 = vector.broadcast %4 : vector<1x512xf32> to vector<8x512xf32>
    %6 = arith.addf %3, %5 : vector<8x512xf32>
    %cst_5 = arith.constant 0.000000e+00 : f32
    %7 = vector.broadcast %cst_5 : f32 to vector<8x512xf32>
    %8 = arith.maximumf %6, %7 : vector<8x512xf32>
    %9 = arith.truncf %8 : vector<8x512xf32> to vector<8x512xbf16>
    %c0_6 = arith.constant 0 : index
    %c0_7 = arith.constant 0 : index
    %10 = vector.load %arg4[%c0_6, %c0_7] : memref<512x512xbf16, #tpu.memory_space<vmem>>, vector<512x512xbf16>
    %cst_8 = arith.constant dense<0.000000e+00> : vector<8x512xf32>
    %11 = tpu.matmul %9, %10, %cst_8 {dimension_numbers = #tpu.dot_dimension_numbers<[1], [0], [0], [1], [0, 0, 1, 1], [], []>} : vector<8x512xbf16>, vector<512x512xbf16>, vector<8x512xf32> -> vector<8x512xf32>
    %c0_9 = arith.constant 0 : index
    %c0_10 = arith.constant 0 : index
    %12 = vector.load %arg5[%c0_9, %c0_10] : memref<1x512xf32, #tpu.memory_space<vmem>>, vector<1x512xf32>
    %13 = vector.broadcast %12 : vector<1x512xf32> to vector<8x512xf32>
    %14 = arith.addf %11, %13 : vector<8x512xf32>
    %cst_11 = arith.constant 0.000000e+00 : f32
    %15 = vector.broadcast %cst_11 : f32 to vector<8x512xf32>
    %16 = arith.maximumf %14, %15 : vector<8x512xf32>
    %17 = arith.truncf %16 : vector<8x512xf32> to vector<8x512xbf16>
    %c0_12 = arith.constant 0 : index
    %c0_13 = arith.constant 0 : index
    %18 = vector.load %arg6[%c0_12, %c0_13] : memref<512x256xbf16, #tpu.memory_space<vmem>>, vector<512x256xbf16>
    %cst_14 = arith.constant dense<0.000000e+00> : vector<8x256xf32>
    %19 = tpu.matmul %17, %18, %cst_14 {dimension_numbers = #tpu.dot_dimension_numbers<[1], [0], [0], [1], [0, 0, 1, 1], [], []>} : vector<8x512xbf16>, vector<512x256xbf16>, vector<8x256xf32> -> vector<8x256xf32>
    %c0_15 = arith.constant 0 : index
    %c0_16 = arith.constant 0 : index
    %20 = vector.load %arg7[%c0_15, %c0_16] : memref<1x256xf32, #tpu.memory_space<vmem>>, vector<1x256xf32>
    %21 = vector.broadcast %20 : vector<1x256xf32> to vector<8x256xf32>
    %22 = arith.addf %19, %21 : vector<8x256xf32>
    %cst_17 = arith.constant 0.000000e+00 : f32
    %23 = vector.broadcast %cst_17 : f32 to vector<8x256xf32>
    %24 = arith.maximumf %22, %23 : vector<8x256xf32>
    %25 = arith.truncf %24 : vector<8x256xf32> to vector<8x256xbf16>
    %c0_18 = arith.constant 0 : index
    %c0_19 = arith.constant 0 : index
    %26 = vector.load %arg8[%c0_18, %c0_19] : memref<256x128xbf16, #tpu.memory_space<vmem>>, vector<256x128xbf16>
    %cst_20 = arith.constant dense<0.000000e+00> : vector<8x128xf32>
    %27 = tpu.matmul %25, %26, %cst_20 {dimension_numbers = #tpu.dot_dimension_numbers<[1], [0], [0], [1], [0, 0, 1, 1], [], []>} : vector<8x256xbf16>, vector<256x128xbf16>, vector<8x128xf32> -> vector<8x128xf32>
    %c0_21 = arith.constant 0 : index
    %c0_22 = arith.constant 0 : index
    %28 = vector.load %arg9[%c0_21, %c0_22] : memref<1x128xf32, #tpu.memory_space<vmem>>, vector<1x128xf32>
    %29 = vector.broadcast %28 : vector<1x128xf32> to vector<8x128xf32>
    %30 = arith.addf %27, %29 : vector<8x128xf32>
    %31 = tpu.iota {dimensions = array<i32: 1>} : vector<8x128xi32>
    %c3_i32 = arith.constant 3 : i32
    %32 = vector.broadcast %c3_i32 : i32 to vector<8x128xi32>
    %33 = arith.cmpi slt, %31, %32 : vector<8x128xi32>
    %cst_23 = arith.constant -1.000000e+30 : f32
    %34 = vector.broadcast %cst_23 : f32 to vector<8x128xf32>
    %35 = arith.select %33, %30, %34 : vector<8x128xi1>, vector<8x128xf32>
    %cst_24 = arith.constant dense<0xFF800000> : vector<8xf32>
    %36 = vector.multi_reduction <maximumf>, %35, %cst_24 [1] : vector<8x128xf32> to vector<8xf32>
    %37 = vector.shape_cast %36 : vector<8xf32> to vector<8x1xf32>
    %38 = vector.broadcast %37 : vector<8x1xf32> to vector<8x128xf32>
    %39 = arith.subf %35, %38 : vector<8x128xf32>
    %40 = math.exp %39 : vector<8x128xf32>
    %cst_25 = arith.constant dense<0.000000e+00> : vector<8xf32>
    %41 = vector.multi_reduction <add>, %40, %cst_25 [1] : vector<8x128xf32> to vector<8xf32>
    %42 = vector.shape_cast %41 : vector<8xf32> to vector<8x1xf32>
    %43 = math.log %42 : vector<8x1xf32>
    %44 = vector.broadcast %43 : vector<8x1xf32> to vector<8x128xf32>
    %45 = arith.subf %39, %44 : vector<8x128xf32>
    %c0_26 = arith.constant 0 : index
    %c0_27 = arith.constant 0 : index
    %46 = vector.load %arg10[%c0_26, %c0_27] : memref<8x128xf32, #tpu.memory_space<vmem>>, vector<8x128xf32>
    tpu.vector_store %arg10[%c0_26, %c0_27], %45 {strides = array<i32>} : memref<8x128xf32, #tpu.memory_space<vmem>>, vector<8x128xf32>,
    return
  }
  func.func @transform_0(%arg0: i32) -> (i32, i32) {
    %c0_i32 = arith.constant 0 : i32
    %c0_i32_0 = arith.constant 0 : i32
    return %arg0, %c0_i32 : i32, i32
  }
  func.func @transform_1(%arg0: i32) -> (i32, i32) {
    %c0_i32 = arith.constant 0 : i32
    %c0_i32_0 = arith.constant 0 : i32
    %c0_i32_1 = arith.constant 0 : i32
    return %c0_i32, %c0_i32_0 : i32, i32
  }
  func.func @transform_2(%arg0: i32) -> (i32, i32) {
    %c0_i32 = arith.constant 0 : i32
    %c0_i32_0 = arith.constant 0 : i32
    %c0_i32_1 = arith.constant 0 : i32
    return %c0_i32, %c0_i32_0 : i32, i32
  }
  func.func @transform_3(%arg0: i32) -> (i32, i32) {
    %c0_i32 = arith.constant 0 : i32
    %c0_i32_0 = arith.constant 0 : i32
    %c0_i32_1 = arith.constant 0 : i32
    return %c0_i32, %c0_i32_0 : i32, i32
  }
  func.func @transform_4(%arg0: i32) -> (i32, i32) {
    %c0_i32 = arith.constant 0 : i32
    %c0_i32_0 = arith.constant 0 : i32
    %c0_i32_1 = arith.constant 0 : i32
    return %c0_i32, %c0_i32_0 : i32, i32
  }
  func.func @transform_5(%arg0: i32) -> (i32, i32) {
    %c0_i32 = arith.constant 0 : i32
    %c0_i32_0 = arith.constant 0 : i32
    %c0_i32_1 = arith.constant 0 : i32
    return %c0_i32, %c0_i32_0 : i32, i32
  }
  func.func @transform_6(%arg0: i32) -> (i32, i32) {
    %c0_i32 = arith.constant 0 : i32
    %c0_i32_0 = arith.constant 0 : i32
    %c0_i32_1 = arith.constant 0 : i32
    return %c0_i32, %c0_i32_0 : i32, i32
  }
  func.func @transform_7(%arg0: i32) -> (i32, i32) {
    %c0_i32 = arith.constant 0 : i32
    %c0_i32_0 = arith.constant 0 : i32
    %c0_i32_1 = arith.constant 0 : i32
    return %c0_i32, %c0_i32_0 : i32, i32
  }
  func.func @transform_8(%arg0: i32) -> (i32, i32) {
    %c0_i32 = arith.constant 0 : i32
    %c0_i32_0 = arith.constant 0 : i32
    %c0_i32_1 = arith.constant 0 : i32
    return %c0_i32, %c0_i32_0 : i32, i32
  }
  func.func @transform_9(%arg0: i32) -> (i32, i32) {
    %c0_i32 = arith.constant 0 : i32
    %c0_i32_0 = arith.constant 0 : i32
    return %arg0, %c0_i32 : i32, i32
  }
}

</mosaic_0001>

<bundles_post_ra>
// kernel: tpu_custom_call.1
= control target key start
LH: loop header
LB: loop body
LE: loop exit
PB: predicated region body
PF: predicated region fallthrough
CT: control target
= control target key end

     0   :  { %14 = vsyncpa [#allocation3], 0  ;;  %s4387_s0 = inlined_call_operand.hbm [shape: f32[8,330], index: 0, kind: input, shape index: {}]   ;;  %s4388_s1 = inlined_call_operand.hbm [shape: bf16[330,512], index: 1, kind: input, shape index: {}]   ;;  %s4389_s2 = inlined_call_operand.hbm [shape: f32[1,512], index: 2, kind: input, shape index: {}]   ;;  %s4390_s3 = inlined_call_operand.hbm [shape: bf16[512,512], index: 3, kind: input, shape index: {}]   ;;  %s4391_s4 = inlined_call_operand.hbm [shape: f32[1,512], index: 4, kind: input, shape index: {}]   ;;  %s4392_s5 = inlined_call_operand.hbm [shape: bf16[512,256], index: 5, kind: input, shape index: {}]   ;;  %s4393_s6 = inlined_call_operand.vmem [shape: f32[1,256], index: 6, kind: input, shape index: {}]   ;;  %s4394_s7 = inlined_call_operand.hbm [shape: bf16[256,128], index: 7, kind: input, shape index: {}]   ;;  %s4395_s8 = inlined_call_operand.vmem [shape: f32[1,128], index: 8, kind: input, shape index: {}]   ;;  %s4396_s9 = inlined_call_operand.hbm [shape: f32[8,128], index: 9, kind: output, shape index: {}]  }
   0x1   :  { %15 = vsyncpa [#allocation6], 0 }
   0x2   :  { %16 = vsyncpa [#allocation9], 0 }
   0x3   :  { %17 = vsyncpa [#allocation12], 0  ;;  %s34_s11 = sshll.u32 %s4388_s1, 4  ;;  %s35_s11 = int_to_ptr.hbm [resolvable:$true] %s34_s11 }
   0x4   :  { %18 = vsyncpa [#allocation4], 0  ;;  %s4204_s12 = smov [#allocation5]   ;;  %s58_s16 = sshll.u32 %s4390_s3, 4  ;;  %s59_s16 = int_to_ptr.hbm [resolvable:$true] %s58_s16 }
   0x5   :  { %s36_s13 = sshll.u32 %s4204_s12, 4  ;;  %s4205_s17 = smov 256   ;;  %s37_s13 = int_to_ptr.vmem [resolvable:$true] %s36_s13 }
   0x6   :  { %s4206_s18 = smov 16   ;;  %s4207_s19 = smov [#allocation8]  }
   0x7   :  { %42 = dma.hbm_to_vmem [thread:$0]  %s35_s11, 10752, %s37_s13, [#allocation6], %s4205_s17, %s4205_s17, %s4206_s18  }
   0x8   :  { %s60_s20 = sshll.u32 %s4207_s19, 4  ;;  %s82_s23 = sshll.u32 %s4392_s5, 4  ;;  %s61_s20 = int_to_ptr.vmem [resolvable:$true] %s60_s20  ;;  %s83_s23 = int_to_ptr.hbm [resolvable:$true] %s82_s23 }
   0x9   :  { %66 = dma.hbm_to_vmem [thread:$0]  %s59_s16, 16384, %s61_s20, [#allocation9], %s4205_s17, %s4205_s17, %s4206_s18  }
   0xa   :  { %s4208_s1 = smov [#allocation11]   ;;  %s24_s3 = sshll.u32 %s4387_s0, 4  ;;  %s25_s3 = int_to_ptr.hbm [resolvable:$true] %s24_s3 }
   0xb   :  { %s84_s24 = sshll.u32 %s4208_s1, 4  ;;  %s4209_s27 = smov 128   ;;  %s85_s24 = int_to_ptr.vmem [resolvable:$true] %s84_s24 }
   0xc   :  { %s4210_s28 = smov 8   ;;  %s4211_s29 = smov [#allocation2]  }
   0xd   :  { %90 = dma.hbm_to_vmem [thread:$0]  %s83_s23, 8192, %s85_s24, [#allocation12], %s4209_s27, %s4209_s27, %s4210_s28  }
   0xe   :  { %s26_s30 = sshll.u32 %s4211_s29, 4  ;;  %s48_s5 = sshll.u32 %s4389_s2, 4  ;;  %s27_s30 = int_to_ptr.vmem [resolvable:$true] %s26_s30  ;;  %s49_s5 = int_to_ptr.hbm [resolvable:$true] %s48_s5 }
   0xf   :  { %29 = dma.hbm_to_vmem [thread:$0]  %s25_s3, 384, %s27_s30, [#allocation3]  }
  0x10   :  { %s72_s14 = sshll.u32 %s4391_s4, 4  ;;  %s4212_s15 = smov [#allocation7]   ;;  %s73_s14 = int_to_ptr.hbm [resolvable:$true] %s72_s14 }
  0x11   :  { %s50_s16 = sshll.u32 %s4212_s15, 4  ;;  %s4213_s0 = smov [#allocation10]   ;;  %s51_s16 = int_to_ptr.vmem [resolvable:$true] %s50_s16 }
  0x12   :  { %53 = dma.hbm_to_vmem [thread:$0]  %s49_s5, 64, %s51_s16, [#allocation6]  }
  0x13   :  { %s74_s17 = sshll.u32 %s4213_s0, 4  ;;  %s97_s20 = sshll.u32 %s4394_s7, 4  ;;  %s75_s17 = int_to_ptr.vmem [resolvable:$true] %s74_s17  ;;  %s98_s20 = int_to_ptr.hbm [resolvable:$true] %s97_s20 }
  0x14   :  { %77 = dma.hbm_to_vmem [thread:$0]  %s73_s14, 64, %s75_s17, [#allocation9]  }
  0x15   :  { %s4214_s2 = smov [#allocation13]   ;;  %s4215_s22 = smov 64  }
  0x16   :  { %s99_s21 = sshll.u32 %s4214_s2, 4  ;;  %s4216_s23 = smov 4   ;;  %s100_s21 = int_to_ptr.vmem [resolvable:$true] %s99_s21 }
  0x17   :  { %105 = dma.hbm_to_vmem [thread:$0]  %s98_s20, 2048, %s100_s21, [#allocation12], %s4215_s22, %s4215_s22, %s4216_s23  }
  0x18   :  { %4194 = dma.done.wait [#allocation3], 384  }
  0x19   :  { %4195 = vsyncadd [#allocation3], 4294966912 }
  0x1a   :  { %4196 = dma.done.wait [#allocation6], 10816  }
  0x1b   :  { %4197 = vsyncadd [#allocation6], 4294956480 }
  0x1c   :  { %4198 = dma.done.wait [#allocation9], 16448  }
  0x1d   :  { %4199 = vsyncadd [#allocation9], 4294950848 }
  0x1e   :  { %4200 = dma.done.wait [#allocation12], 10240  }
  0x1f   :  { %4201 = vsyncadd [#allocation12], 4294957056  ;;  %vm657_vm0 = vcmask 1044480   ;;  %v2633_v0 = vld [vmem:[#allocation5 + $0xe0] sm:$0xf]  ;;  %v139_v52 = vld [vmem:[#allocation2 + $0x10] sm:$0xff] }
  0x20   :  { %v3721_v1 = vld [vmem:[#allocation5 + $0xec] sm:$0xf0]  ;;  %v2841_v2 = vld [vmem:[#allocation5 + $0x280] sm:$0xf]  ;;  %v3751_v35 = vld [vmem:[#allocation5 + $0x1e4] sm:$0xf] }
  0x21   :  { %v2634_v3 = vor.u32 %v3721_v1, %v2633_v0  ;;  %v3773_v4 = vld [vmem:[#allocation5 + $0x28c] sm:$0x10]  ;;  %v2761_v5 = vld [vmem:[#allocation5 + $0x1e0] sm:$0xf]  ;;  %v2763_v39 = vld [vmem:[#allocation5 + $0x1f0] sm:$0xf0] }
  0x22   :  { %v3753_v6 = vld [vmem:[#allocation5 + $0x1ec] sm:$0xf0]  ;;  %v2842_v7 = vor.u32 %v3773_v4, %v2841_v2  ;;  %v2617_v9 = vld [vmem:[#allocation5 + $0xc0] sm:$0xf]  ;;  %v2766_v44 = vor.u32 %v3751_v35, %v2763_v39  ;;  %v3747_v46 = vld [vmem:[#allocation5 + $0x1c4] sm:$0xf] }
  0x23   :  { %v2762_v8 = vor.u32 %v3753_v6, %v2761_v5  ;;  %v3717_v10 = vld [vmem:[#allocation5 + $0xcc] sm:$0xf0]  ;;  %v2825_v11 = vld [vmem:[#allocation5 + $0x260] sm:$0xf]  ;;  %670 = vmatpush.bf16.msra.mxu0 %v2634_v3  ;;  %v2747_v47 = vld [vmem:[#allocation5 + $0x1d0] sm:$0xf0]  ;;  %v4290_v5 = vpack.c.bf16 %v139_v52, %v139_v52 }
  0x24   :  { %v2618_v12 = vor.u32 %v3717_v10, %v2617_v9  ;;  %v3769_v13 = vld [vmem:[#allocation5 + $0x26c] sm:$0xf0]  ;;  %v2745_v14 = vld [vmem:[#allocation5 + $0x1c0] sm:$0xf]  ;;  %v659_v16 = vsel %vm657_vm0, %v2842_v7, 0  ;;  %722 = vmatpush.bf16.msra.mxu2 %v2766_v44  ;;  %v2750_v51 = vor.u32 %v3747_v46, %v2747_v47  ;;  %vm653_vm1 = vcmask 605184  }
  0x25   :  { %v3749_v15 = vld [vmem:[#allocation5 + $0x1cc] sm:$0xf0]  ;;  %683 = vmatpush.bf16.msra.mxu1 %v2762_v8  ;;  %v2601_v18 = vld [vmem:[#allocation5 + $0xa0] sm:$0xf]  ;;  %699 = vmatpush.bf16.msra.mxu3 %v659_v16  ;;  %v2826_v20 = vor.u32 %v3769_v13, %v2825_v11  ;;  %v3719_v49 = vld [vmem:[#allocation5 + $0xe4] sm:$0xf] }
  0x26   :  { %v2746_v17 = vor.u32 %v3749_v15, %v2745_v14  ;;  %v3713_v19 = vld [vmem:[#allocation5 + $0xac] sm:$0xf0]  ;;  %v2729_v21 = vld [vmem:[#allocation5 + $0x1a0] sm:$0xf]  ;;  %v2635_v50 = vld [vmem:[#allocation5 + $0xf0] sm:$0xf0] }
  0x27   :  { %v2809_v22 = vld [vmem:[#allocation5 + $0x240] sm:$0xf]  ;;  %v3765_v23 = vld [vmem:[#allocation5 + $0x24c] sm:$0xf0]  ;;  %671 = vmatpush.bf16.msra.mxu0 %v2618_v12  ;;  %v2602_v25 = vor.u32 %v3713_v19, %v2601_v18  ;;  %v3743_v59 = vld [vmem:[#allocation5 + $0x1a4] sm:$0xf]  ;;  %v2638_v61 = vor.u32 %v3719_v49, %v2635_v50 }
  0x28   :  { %v3745_v24 = vld [vmem:[#allocation5 + $0x1ac] sm:$0xf0]  ;;  %v2585_v27 = vld [vmem:[#allocation5 + $0x80] sm:$0xf]  ;;  %v2810_v29 = vor.u32 %v3765_v23, %v2809_v22  ;;  %v2731_v60 = vld [vmem:[#allocation5 + $0x1b0] sm:$0xf0]  ;;  %723 = vmatpush.bf16.msra.mxu2 %v2750_v51 }
  0x29   :  { %684 = vmatpush.bf16.msra.mxu1 %v2746_v17  ;;  %v2730_v26 = vor.u32 %v3745_v24, %v2729_v21  ;;  %v3709_v28 = vld [vmem:[#allocation5 + $0x8c] sm:$0xf0]  ;;  %700 = vmatpush.bf16.msra.mxu3 %v2826_v20  ;;  %v2713_v30 = vld [vmem:[#allocation5 + $0x180] sm:$0xf]  ;;  %v3715_v63 = vld [vmem:[#allocation5 + $0xc4] sm:$0xf]  ;;  %v2734_v2 = vor.u32 %v3743_v59, %v2731_v60 }
  0x2a   :  { %v3741_v31 = vld [vmem:[#allocation5 + $0x18c] sm:$0xf0]  ;;  %v2793_v32 = vld [vmem:[#allocation5 + $0x220] sm:$0xf]  ;;  %v2586_v34 = vor.u32 %v3709_v28, %v2585_v27  ;;  %v2619_v0 = vld [vmem:[#allocation5 + $0xd0] sm:$0xf0] }
  0x2b   :  { %v3761_v33 = vld [vmem:[#allocation5 + $0x22c] sm:$0xf0]  ;;  %672 = vmatpush.bf16.msra.mxu0 %v2602_v25  ;;  %v2714_v36 = vor.u32 %v3741_v31, %v2713_v30  ;;  %v2569_v37 = vld [vmem:[#allocation5 + $0x60] sm:$0xf]  ;;  %v3739_v6 = vld [vmem:[#allocation5 + $0x184] sm:$0xf]  ;;  %v2622_v10 = vor.u32 %v3715_v63, %v2619_v0 }
  0x2c   :  { %v3705_v38 = vld [vmem:[#allocation5 + $0x6c] sm:$0xf0]  ;;  %v2794_v40 = vor.u32 %v3761_v33, %v2793_v32  ;;  %v2777_v41 = vld [vmem:[#allocation5 + $0x200] sm:$0xf]  ;;  %v2715_v7 = vld [vmem:[#allocation5 + $0x190] sm:$0xf0]  ;;  %724 = vmatpush.bf16.msra.mxu2 %v2734_v2 }
  0x2d   :  { %685 = vmatpush.bf16.msra.mxu1 %v2730_v26  ;;  %701 = vmatpush.bf16.msra.mxu3 %v2810_v29  ;;  %v2697_v42 = vld [vmem:[#allocation5 + $0x160] sm:$0xf]  ;;  %v3737_v43 = vld [vmem:[#allocation5 + $0x16c] sm:$0xf0]  ;;  %v2570_v48 = vor.u32 %v3705_v38, %v2569_v37  ;;  %v3711_v11 = vld [vmem:[#allocation5 + $0xa4] sm:$0xf]  ;;  %v2718_v16 = vor.u32 %v3739_v6, %v2715_v7 }
  0x2e   :  { %v3757_v45 = vld [vmem:[#allocation5 + $0x20c] sm:$0xf0]  ;;  %v2698_v53 = vor.u32 %v3737_v43, %v2697_v42  ;;  %v2553_v54 = vld [vmem:[#allocation5 + $0x40] sm:$0xf]  ;;  %v2603_v13 = vld [vmem:[#allocation5 + $0xb0] sm:$0xf0] }
  0x2f   :  { %673 = vmatpush.bf16.msra.mxu0 %v2586_v34  ;;  %v3701_v55 = vld [vmem:[#allocation5 + $0x4c] sm:$0xf0]  ;;  %v2681_v56 = vld [vmem:[#allocation5 + $0x140] sm:$0xf]  ;;  %v2778_v57 = vor.u32 %v3757_v45, %v2777_v41  ;;  %v3735_v19 = vld [vmem:[#allocation5 + $0x164] sm:$0xf]  ;;  %v2606_v24 = vor.u32 %v3711_v11, %v2603_v13 }
  0x30   :  { %v3733_v58 = vld [vmem:[#allocation5 + $0x14c] sm:$0xf0]  ;;  %v2554_v62 = vor.u32 %v3701_v55, %v2553_v54  ;;  %v2537_v1 = vld [vmem:[#allocation5 + $0x20] sm:$0xf]  ;;  %v2699_v20 = vld [vmem:[#allocation5 + $0x170] sm:$0xf0]  ;;  %725 = vmatpush.bf16.msra.mxu2 %v2718_v16 }
  0x31   :  { %686 = vmatpush.bf16.msra.mxu1 %v2714_v36  ;;  %702 = vmatpush.bf16.msra.mxu3 %v2794_v40  ;;  %v2682_v3 = vor.u32 %v3733_v58, %v2681_v56  ;;  %v3697_v4 = vld [vmem:[#allocation5 + $0x2c] sm:$0xf0]  ;;  %v2665_v8 = vld [vmem:[#allocation5 + $0x120] sm:$0xf]  ;;  %v3771_v22 = vld [vmem:[#allocation5 + $0x284] sm:$0xf]  ;;  %v2702_v32 = vor.u32 %v3735_v19, %v2699_v20 }
  0x32   :  { %v3729_v9 = vld [vmem:[#allocation5 + $0x12c] sm:$0xf0]  ;;  %v2538_v12 = vor.u32 %v3697_v4, %v2537_v1  ;;  %v2521_v14 = vld [vmem:[#allocation5] sm:$0xf]  ;;  %v2843_v23 = vld [vmem:[#allocation5 + $0x290] sm:$0x10] }
  0x33   :  { %674 = vmatpush.bf16.msra.mxu0 %v2570_v48  ;;  %v3693_v15 = vld [vmem:[#allocation5 + $0xc] sm:$0xf0]  ;;  %v2666_v17 = vor.u32 %v3729_v9, %v2665_v8  ;;  %v2649_v18 = vld [vmem:[#allocation5 + $0x100] sm:$0xf]  ;;  %v2641_v25 = vld [vmem:[#allocation5 + $0xe8] sm:$0xf]  ;;  %v2846_v27 = vor.u32 %v3771_v22, %v2843_v23 }
  0x34   :  { %v3725_v21 = vld [vmem:[#allocation5 + $0x10c] sm:$0xf0]  ;;  %v3722_v26 = vld [vmem:[#allocation5 + $0xf4] sm:$0xf0]  ;;  %v2522_v28 = vor.u32 %v3693_v15, %v2521_v14  ;;  %v3707_v29 = vld [vmem:[#allocation5 + $0x84] sm:$0xf]  ;;  %726 = vmatpush.bf16.msra.mxu2 %v2702_v32 }
  0x35   :  { %687 = vmatpush.bf16.msra.mxu1 %v2698_v53  ;;  %703 = vmatpush.bf16.msra.mxu3 %v2778_v57  ;;  %v2587_v30 = vld [vmem:[#allocation5 + $0x90] sm:$0xf0]  ;;  %v137_v31 = vld [vmem:[#allocation2] sm:$0xff]  ;;  %v2650_v33 = vor.u32 %v3725_v21, %v2649_v18  ;;  %v3731_v35 = vld [vmem:[#allocation5 + $0x144] sm:$0xf]  ;;  %v2642_v37 = vor.u32 %v3722_v26, %v2641_v25  ;;  %v662_v38 = vsel %vm657_vm0, %v2846_v27, 0 }
  0x36   :  { %v138_v34 = vld [vmem:[#allocation2 + $0x8] sm:$0xff]  ;;  %v3767_v39 = vld [vmem:[#allocation5 + $0x264] sm:$0xf]  ;;  %v2590_v41 = vor.u32 %v3707_v29, %v2587_v30  ;;  %v4295_v42 = vpack.c.bf16 %v137_v31, %v137_v31  ;;  %v2625_v43 = vld [vmem:[#allocation5 + $0xc8] sm:$0xf]  ;;  %s4217_s24 = smov [#allocation14]  }
  0x37   :  { %675 = vmatpush.bf16.msra.mxu0 %v2554_v62  ;;  %v2683_v36 = vld [vmem:[#allocation5 + $0x150] sm:$0xf0]  ;;  %v3718_v44 = vld [vmem:[#allocation5 + $0xd4] sm:$0xf0]  ;;  %v4297_v45 = vpack.c.bf16 %v138_v34, %v138_v34  ;;  %v3703_v46 = vld [vmem:[#allocation5 + $0x64] sm:$0xf] }
  0x38   :  { %2855 = vmatmul.msk.bf16.vlgmr.msra.gmra.mxu3 %vm653_vm1, %v4290_v5  ;;  %v2827_v40 = vld [vmem:[#allocation5 + $0x270] sm:$0xf0]  ;;  %v2686_v48 = vor.u32 %v3731_v35, %v2683_v36  ;;  %v3727_v49 = vld [vmem:[#allocation5 + $0x124] sm:$0xf]  ;;  %v2626_v52 = vor.u32 %v3718_v44, %v2625_v43  ;;  %v2609_v56 = vld [vmem:[#allocation5 + $0xa8] sm:$0xf] }
  0x39   :  { %709 = vmatpush.bf16.msrb.mxu3 %v2638_v61  ;;  %688 = vmatpush.bf16.msra.mxu1 %v2682_v3  ;;  %v2571_v47 = vld [vmem:[#allocation5 + $0x70] sm:$0xf0]  ;;  %v2830_v51 = vor.u32 %v3767_v39, %v2827_v40  ;;  %v3763_v53 = vld [vmem:[#allocation5 + $0x244] sm:$0xf]  ;;  %v3714_v57 = vld [vmem:[#allocation5 + $0xb4] sm:$0xf0] }
  0x3a   :  { %v2667_v50 = vld [vmem:[#allocation5 + $0x130] sm:$0xf0]  ;;  %v2574_v55 = vor.u32 %v3703_v46, %v2571_v47  ;;  %v3699_v58 = vld [vmem:[#allocation5 + $0x44] sm:$0xf]  ;;  %727 = vmatpush.bf16.msra.mxu2 %v2686_v48  ;;  %v2610_v1 = vor.u32 %v3714_v57, %v2609_v56  ;;  %v3720_v3 = vld [vmem:[#allocation5 + $0xec] sm:$0xf] }
  0x3b   :  { %676 = vmatpush.bf16.msra.mxu0 %v2538_v12  ;;  %v2811_v54 = vld [vmem:[#allocation5 + $0x250] sm:$0xf0]  ;;  %v2670_v60 = vor.u32 %v3727_v49, %v2667_v50  ;;  %v3723_v61 = vld [vmem:[#allocation5 + $0x104] sm:$0xf]  ;;  %v2643_v4 = vld [vmem:[#allocation5 + $0xf8] sm:$0xf0] }
  0x3c   :  { %v2555_v59 = vld [vmem:[#allocation5 + $0x50] sm:$0xf0]  ;;  %v2814_v63 = vor.u32 %v3763_v53, %v2811_v54  ;;  %v3759_v0 = vld [vmem:[#allocation5 + $0x224] sm:$0xf]  ;;  %v2593_v7 = vld [vmem:[#allocation5 + $0x88] sm:$0xf]  ;;  %v2646_v14 = vor.u32 %v3720_v3, %v2643_v4 }
  0x3d   :  { %710 = vmatpush.bf16.msrb.mxu3 %v2622_v10  ;;  %689 = vmatpush.bf16.msra.mxu1 %v2666_v17  ;;  %v2651_v62 = vld [vmem:[#allocation5 + $0x110] sm:$0xf0]  ;;  %v2558_v6 = vor.u32 %v3699_v58, %v2555_v59  ;;  %v3710_v8 = vld [vmem:[#allocation5 + $0x94] sm:$0xf0]  ;;  %v3695_v9 = vld [vmem:[#allocation5 + $0x24] sm:$0xf] }
  0x3e   :  { %v2795_v2 = vld [vmem:[#allocation5 + $0x230] sm:$0xf0]  ;;  %728 = vmatpush.bf16.msra.mxu2 %v2670_v60  ;;  %v2654_v11 = vor.u32 %v3723_v61, %v2651_v62  ;;  %v2577_v12 = vld [vmem:[#allocation5 + $0x68] sm:$0xf]  ;;  %v3755_v15 = vld [vmem:[#allocation5 + $0x204] sm:$0xf]  ;;  %v2594_v16 = vor.u32 %v3710_v8, %v2593_v7 }
  0x3f   :  { %677 = vmatpush.bf16.msra.mxu0 %v2522_v28  ;;  %v2539_v10 = vld [vmem:[#allocation5 + $0x30] sm:$0xf0]  ;;  %v2798_v13 = vor.u32 %v3759_v0, %v2795_v2  ;;  %v3716_v18 = vld [vmem:[#allocation5 + $0xcc] sm:$0xf]  ;;  %v2627_v19 = vld [vmem:[#allocation5 + $0xd8] sm:$0xf0] }
  0x40   :  { %v2779_v17 = vld [vmem:[#allocation5 + $0x210] sm:$0xf0]  ;;  %v2542_v20 = vor.u32 %v3695_v9, %v2539_v10  ;;  %v3706_v21 = vld [vmem:[#allocation5 + $0x74] sm:$0xf0]  ;;  %v2849_v22 = vld [vmem:[#allocation5 + $0x288] sm:$0xf]  ;;  %v2630_v30 = vor.u32 %v3716_v18, %v2627_v19 }
  0x41   :  { %711 = vmatpush.bf16.msrb.mxu3 %v2606_v24  ;;  %690 = vmatpush.bf16.msra.mxu1 %v2650_v33  ;;  %v3774_v23 = vld [vmem:[#allocation5 + $0x294] sm:$0x10]  ;;  %v3691_v24 = vld [vmem:[#allocation5 + $0x4] sm:$0xf]  ;;  %v2523_v25 = vld [vmem:[#allocation5 + $0x10] sm:$0xf0]  ;;  %v2782_v29 = vor.u32 %v3755_v15, %v2779_v17  ;;  %v2578_v31 = vor.u32 %v3706_v21, %v2577_v12 }
  0x42   :  { %678 = vmatmul.bf16.vlgmr.msra.gmra.mxu0 %v4295_v42  ;;  %729 = vmatpush.bf16.msra.mxu2 %v2654_v11  ;;  %v2850_v26 = vor.u32 %v3774_v23, %v2849_v22  ;;  %v2769_v27 = vld [vmem:[#allocation5 + $0x1e8] sm:$0xf]  ;;  %v3754_v28 = vld [vmem:[#allocation5 + $0x1f4] sm:$0xf0]  ;;  %v3712_v32 = vld [vmem:[#allocation5 + $0xac] sm:$0xf]  ;;  %v2526_v34 = vor.u32 %v3691_v24, %v2523_v25 }
  0x43   :  { %738 = vmatpush.bf16.msrb.mxu0 %v662_v38  ;;  %v2611_v33 = vld [vmem:[#allocation5 + $0xb8] sm:$0xf0]  ;;  %v2561_v35 = vld [vmem:[#allocation5 + $0x48] sm:$0xf]  ;;  %v3702_v36 = vld [vmem:[#allocation5 + $0x54] sm:$0xf0]  ;;  %v2770_v38 = vor.u32 %v3754_v28, %v2769_v27 }
  0x44   :  { %691 = vmatmul.bf16.vlgmr.msra.gmra.mxu1 %v4297_v45  ;;  %v2833_v39 = vld [vmem:[#allocation5 + $0x268] sm:$0xf]  ;;  %v3770_v40 = vld [vmem:[#allocation5 + $0x274] sm:$0xf0]  ;;  %v2614_v44 = vor.u32 %v3712_v32, %v2611_v33  ;;  %v2562_v46 = vor.u32 %v3702_v36, %v2561_v35  ;;  %v3708_v47 = vld [vmem:[#allocation5 + $0x8c] sm:$0xf] }
  0x45   :  { %748 = vmatpush.bf16.msrb.mxu1 %v2642_v37  ;;  %712 = vmatpush.bf16.msrb.mxu3 %v2590_v41  ;;  %v665_v37 = vsel %vm657_vm0, %v2850_v26, 0  ;;  %v2753_v41 = vld [vmem:[#allocation5 + $0x1c8] sm:$0xf]  ;;  %v3750_v43 = vld [vmem:[#allocation5 + $0x1d4] sm:$0xf0]  ;;  %s2504_s25 = sshll.u32 %s4217_s24, 4  ;;  %s2505_s25 = int_to_ptr.vmem [resolvable:$true] %s2504_s25 }
  0x46   :  { %787 = vmatpush.bf16.msrb.mxu2 %v2646_v14  ;;  %v2595_v48 = vld [vmem:[#allocation5 + $0x98] sm:$0xf0]  ;;  %v2545_v49 = vld [vmem:[#allocation5 + $0x28] sm:$0xf]  ;;  %v3698_v50 = vld [vmem:[#allocation5 + $0x34] sm:$0xf0] }
  0x47   :  { %739 = vmatpush.bf16.msrb.mxu0 %v2830_v51  ;;  %730 = vmatmul.bf16.vlgmr.msra.gmra.mxu2 %v4297_v45  ;;  %v2834_v51 = vor.u32 %v3770_v40, %v2833_v39  ;;  %v2817_v53 = vld [vmem:[#allocation5 + $0x248] sm:$0xf]  ;;  %v3766_v54 = vld [vmem:[#allocation5 + $0x254] sm:$0xf0]  ;;  %v2598_v57 = vor.u32 %v3708_v47, %v2595_v48  ;;  %v2546_v58 = vor.u32 %v3698_v50, %v2545_v49  ;;  %v3704_v59 = vld [vmem:[#allocation5 + $0x6c] sm:$0xf] }
  0x48   :  { %v3746_v56 = vld [vmem:[#allocation5 + $0x1b4] sm:$0xf0]  ;;  %v2579_v60 = vld [vmem:[#allocation5 + $0x78] sm:$0xf0]  ;;  %v2529_v61 = vld [vmem:[#allocation5 + $0x8] sm:$0xf]  ;;  %v2818_v0 = vor.u32 %v3766_v54, %v2817_v53 }
  0x49   :  { %749 = vmatpush.bf16.msrb.mxu1 %v2626_v52  ;;  %713 = vmatpush.bf16.msrb.mxu3 %v2574_v55  ;;  %v2754_v52 = vor.u32 %v3750_v43, %v2753_v41  ;;  %v2737_v55 = vld [vmem:[#allocation5 + $0x1a8] sm:$0xf]  ;;  %v3694_v62 = vld [vmem:[#allocation5 + $0x14] sm:$0xf0]  ;;  %v2771_v2 = vld [vmem:[#allocation5 + $0x1f8] sm:$0xf0]  ;;  %v2582_v8 = vor.u32 %v3704_v59, %v2579_v60 }
  0x4a   :  { %788 = vmatpush.bf16.msrb.mxu2 %v2630_v30  ;;  %v2801_v3 = vld [vmem:[#allocation5 + $0x228] sm:$0xf]  ;;  %v3762_v4 = vld [vmem:[#allocation5 + $0x234] sm:$0xf0]  ;;  %v2530_v9 = vor.u32 %v3694_v62, %v2529_v61  ;;  %v3700_v10 = vld [vmem:[#allocation5 + $0x4c] sm:$0xf] }
  0x4b   :  { %740 = vmatpush.bf16.msrb.mxu0 %v2814_v63  ;;  %v3752_v63 = vld [vmem:[#allocation5 + $0x1ec] sm:$0xf]  ;;  %v3742_v7 = vld [vmem:[#allocation5 + $0x194] sm:$0xf0]  ;;  %v2563_v11 = vld [vmem:[#allocation5 + $0x58] sm:$0xf0]  ;;  %v2802_v14 = vor.u32 %v3762_v4, %v2801_v3 }
  0x4c   :  { %v2774_v12 = vor.u32 %v3752_v63, %v2771_v2  ;;  %v2785_v17 = vld [vmem:[#allocation5 + $0x208] sm:$0xf]  ;;  %v3758_v18 = vld [vmem:[#allocation5 + $0x214] sm:$0xf0]  ;;  %v2566_v21 = vor.u32 %v3700_v10, %v2563_v11  ;;  %v3696_v22 = vld [vmem:[#allocation5 + $0x2c] sm:$0xf] }
  0x4d   :  { %750 = vmatpush.bf16.msrb.mxu1 %v2610_v1  ;;  %714 = vmatpush.bf16.msrb.mxu3 %v2558_v6  ;;  %v2738_v1 = vor.u32 %v3746_v56, %v2737_v55  ;;  %v2721_v6 = vld [vmem:[#allocation5 + $0x188] sm:$0xf]  ;;  %v2547_v23 = vld [vmem:[#allocation5 + $0x38] sm:$0xf0]  ;;  %v2786_v25 = vor.u32 %v3758_v18, %v2785_v17  ;;  %v3744_v27 = vld [vmem:[#allocation5 + $0x1ac] sm:$0xf] }
  0x4e   :  { %789 = vmatpush.bf16.msrb.mxu2 %v2614_v44  ;;  %v2722_v15 = vor.u32 %v3742_v7, %v2721_v6  ;;  %v2705_v19 = vld [vmem:[#allocation5 + $0x168] sm:$0xf]  ;;  %v2739_v28 = vld [vmem:[#allocation5 + $0x1b8] sm:$0xf0]  ;;  %v3734_v30 = vld [vmem:[#allocation5 + $0x154] sm:$0xf0] }
  0x4f   :  { %741 = vmatpush.bf16.msrb.mxu0 %v2798_v13  ;;  %v3748_v13 = vld [vmem:[#allocation5 + $0x1cc] sm:$0xf]  ;;  %v2531_v33 = vld [vmem:[#allocation5 + $0x18] sm:$0xf0]  ;;  %v2673_v35 = vld [vmem:[#allocation5 + $0x128] sm:$0xf] }
  0x50   :  { %v3692_v32 = vld [vmem:[#allocation5 + $0xc] sm:$0xf]  ;;  %v3730_v36 = vld [vmem:[#allocation5 + $0x134] sm:$0xf0]  ;;  %v2973_v40 = vld [vmem:[#allocation8 + $0xe0] sm:$0xf] }
  0x51   :  { %751 = vmatpush.bf16.msrb.mxu1 %v2594_v16  ;;  %715 = vmatpush.bf16.msrb.mxu3 %v2542_v20  ;;  %v2755_v16 = vld [vmem:[#allocation5 + $0x1d8] sm:$0xf0]  ;;  %v3738_v20 = vld [vmem:[#allocation5 + $0x174] sm:$0xf0]  ;;  %v3805_v41 = vld [vmem:[#allocation8 + $0xec] sm:$0xf0]  ;;  %v2534_v47 = vor.u32 %v3692_v32, %v2531_v33  ;;  %v2674_v54 = vor.u32 %v3730_v36, %v2673_v35 }
  0x52   :  { %790 = vmatpush.bf16.msrb.mxu2 %v2598_v57  ;;  %v2758_v24 = vor.u32 %v3748_v13, %v2755_v16  ;;  %v2706_v26 = vor.u32 %v3738_v20, %v2705_v19  ;;  %v2957_v43 = vld [vmem:[#allocation8 + $0xc0] sm:$0xf]  ;;  %v3772_v44 = vld [vmem:[#allocation5 + $0x28c] sm:$0xf]  ;;  %v2974_v48 = vor.u32 %v3805_v41, %v2973_v40  ;;  %v3801_v49 = vld [vmem:[#allocation8 + $0xcc] sm:$0xf0] }
  0x53   :  { %742 = vmatpush.bf16.msrb.mxu0 %v2782_v29  ;;  %v2689_v29 = vld [vmem:[#allocation5 + $0x148] sm:$0xf]  ;;  %v2958_v53 = vor.u32 %v3801_v49, %v2957_v43  ;;  %v2941_v56 = vld [vmem:[#allocation8 + $0xa0] sm:$0xf]  ;;  %v3797_v57 = vld [vmem:[#allocation8 + $0xac] sm:$0xf0] }
  0x54   :  { %v2690_v39 = vor.u32 %v3734_v30, %v2689_v29  ;;  %v2657_v59 = vld [vmem:[#allocation5 + $0x108] sm:$0xf]  ;;  %v3726_v60 = vld [vmem:[#allocation5 + $0x114] sm:$0xf0]  ;;  %v3837_v61 = vld [vmem:[#allocation8 + $0x1ec] sm:$0xf0]  ;;  %v2942_v2 = vor.u32 %v3797_v57, %v2941_v56 }
  0x55   :  { %752 = vmatpush.bf16.msrb.mxu1 %v2578_v31  ;;  %716 = vmatpush.bf16.msrb.mxu3 %v2526_v34  ;;  %v2550_v31 = vor.u32 %v3696_v22, %v2547_v23  ;;  %v2742_v34 = vor.u32 %v3744_v27, %v2739_v28  ;;  %v3085_v63 = vld [vmem:[#allocation8 + $0x1c0] sm:$0xf]  ;;  %v2658_v3 = vor.u32 %v3726_v60, %v2657_v59  ;;  %v3732_v6 = vld [vmem:[#allocation5 + $0x14c] sm:$0xf]  ;;  %v2691_v7 = vld [vmem:[#allocation5 + $0x158] sm:$0xf0] }
  0x56   :  { %2856 = vmatmul.msk.bf16.vlgmr.msrb.gmra.mxu0 %vm653_vm1, %v4290_v5  ;;  %791 = vmatpush.bf16.msrb.mxu2 %v2582_v8  ;;  %v3768_v8 = vld [vmem:[#allocation5 + $0x26c] sm:$0xf]  ;;  %v3793_v10 = vld [vmem:[#allocation8 + $0x8c] sm:$0xf0]  ;;  %v3069_v13 = vld [vmem:[#allocation8 + $0x1a0] sm:$0xf] }
  0x57   :  { %777 = vmatpush.bf16.msra.mxu0 %v665_v37  ;;  %v3740_v37 = vld [vmem:[#allocation5 + $0x18c] sm:$0xf]  ;;  %v2675_v17 = vld [vmem:[#allocation5 + $0x138] sm:$0xf0]  ;;  %v2893_v32 = vld [vmem:[#allocation8 + $0x40] sm:$0xf] }
  0x58   :  { %717 = vmatmul.bf16.vlgmr.msrb.gmra.mxu3 %v4295_v42  ;;  %v3728_v16 = vld [vmem:[#allocation5 + $0x12c] sm:$0xf]  ;;  %v2819_v23 = vld [vmem:[#allocation5 + $0x258] sm:$0xf0]  ;;  %v3785_v33 = vld [vmem:[#allocation8 + $0x4c] sm:$0xf0] }
  0x59   :  { %761 = vmatpush.bf16.msra.mxu3 %v2770_v38  ;;  %753 = vmatpush.bf16.msrb.mxu1 %v2562_v46  ;;  %v2723_v38 = vld [vmem:[#allocation5 + $0x198] sm:$0xf0]  ;;  %v3764_v20 = vld [vmem:[#allocation5 + $0x24c] sm:$0xf]  ;;  %v3037_v36 = vld [vmem:[#allocation8 + $0x160] sm:$0xf] }
  0x5a   :  { %792 = vmatpush.bf16.msrb.mxu2 %v2566_v21  ;;  %v2851_v46 = vld [vmem:[#allocation5 + $0x298] sm:$0x10]  ;;  %v2726_v50 = vor.u32 %v3740_v37, %v2723_v38  ;;  %v2909_v21 = vld [vmem:[#allocation8 + $0x60] sm:$0xf]  ;;  %v3724_v27 = vld [vmem:[#allocation5 + $0x10c] sm:$0xf]  ;;  %v2822_v30 = vor.u32 %v3764_v20, %v2819_v23 }
  0x5b   :  { %778 = vmatpush.bf16.msra.mxu0 %v2834_v51  ;;  %v3736_v51 = vld [vmem:[#allocation5 + $0x16c] sm:$0xf]  ;;  %v2854_v55 = vor.u32 %v3772_v44, %v2851_v46  ;;  %v2659_v28 = vld [vmem:[#allocation5 + $0x118] sm:$0xf0]  ;;  %v3821_v37 = vld [vmem:[#allocation8 + $0x16c] sm:$0xf0] }
  0x5c   :  { %v2803_v35 = vld [vmem:[#allocation5 + $0x238] sm:$0xf0]  ;;  %v2662_v38 = vor.u32 %v3724_v27, %v2659_v28  ;;  %v3756_v41 = vld [vmem:[#allocation5 + $0x20c] sm:$0xf]  ;;  %v2877_v43 = vld [vmem:[#allocation8 + $0x20] sm:$0xf]  ;;  %v3038_v46 = vor.u32 %v3821_v37, %v3037_v36 }
  0x5d   :  { %762 = vmatpush.bf16.msra.mxu3 %v2754_v52  ;;  %754 = vmatpush.bf16.msrb.mxu1 %v2546_v58  ;;  %v2707_v52 = vld [vmem:[#allocation5 + $0x178] sm:$0xf0]  ;;  %v3101_v58 = vld [vmem:[#allocation8 + $0x1e0] sm:$0xf]  ;;  %v668_v4 = vsel %vm657_vm0, %v2854_v55, 0  ;;  %s2506_s3 = sshll.u32 %s4396_s9, 4  ;;  %s2507_s3 = int_to_ptr.hbm [resolvable:$true] %s2506_s3 }
  0x5e   :  { %793 = vmatpush.bf16.msrb.mxu2 %v2550_v31  ;;  %v3102_v62 = vor.u32 %v3837_v61, %v3101_v58  ;;  %v3760_v31 = vld [vmem:[#allocation5 + $0x22c] sm:$0xf]  ;;  %v3781_v44 = vld [vmem:[#allocation8 + $0x2c] sm:$0xf0]  ;;  %v3803_v55 = vld [vmem:[#allocation8 + $0xe4] sm:$0xf] }
  0x5f   :  { %779 = vmatpush.bf16.msra.mxu0 %v2818_v0  ;;  %v3833_v0 = vld [vmem:[#allocation8 + $0x1cc] sm:$0xf0]  ;;  %v2806_v40 = vor.u32 %v3760_v31, %v2803_v35  ;;  %v2975_v56 = vld [vmem:[#allocation8 + $0xf0] sm:$0xf0]  ;;  %v3799_v59 = vld [vmem:[#allocation8 + $0xc4] sm:$0xf] }
  0x60   :  { %v3086_v11 = vor.u32 %v3833_v0, %v3085_v63  ;;  %v3817_v49 = vld [vmem:[#allocation8 + $0x14c] sm:$0xf0]  ;;  %v2978_v58 = vor.u32 %v3803_v55, %v2975_v56  ;;  %v2959_v60 = vld [vmem:[#allocation8 + $0xd0] sm:$0xf0]  ;;  %v3835_v20 = vld [vmem:[#allocation8 + $0x1e4] sm:$0xf] }
  0x61   :  { %763 = vmatpush.bf16.msra.mxu3 %v2738_v1  ;;  %755 = vmatpush.bf16.msrb.mxu1 %v2530_v9  ;;  %v2710_v1 = vor.u32 %v3736_v51, %v2707_v52  ;;  %v2925_v9 = vld [vmem:[#allocation8 + $0x80] sm:$0xf]  ;;  %v2962_v61 = vor.u32 %v3799_v59, %v2959_v60  ;;  %v2943_v63 = vld [vmem:[#allocation8 + $0xb0] sm:$0xf0]  ;;  %v3831_v28 = vld [vmem:[#allocation8 + $0x1c4] sm:$0xf] }
  0x62   :  { %794 = vmatpush.bf16.msrb.mxu2 %v2534_v47  ;;  %v2926_v18 = vor.u32 %v3793_v10, %v2925_v9  ;;  %v2787_v47 = vld [vmem:[#allocation5 + $0x218] sm:$0xf0]  ;;  %v2861_v52 = vld [vmem:[#allocation8] sm:$0xf]  ;;  %v2895_v10 = vld [vmem:[#allocation8 + $0x50] sm:$0xf0] }
  0x63   :  { %780 = vmatpush.bf16.msra.mxu0 %v2802_v14  ;;  %v3829_v14 = vld [vmem:[#allocation8 + $0x1ac] sm:$0xf0]  ;;  %v2790_v51 = vor.u32 %v3756_v41, %v2787_v47  ;;  %v3213_v23 = vld [vmem:[#allocation8 + $0x2c0] sm:$0xf]  ;;  %v2863_v27 = vld [vmem:[#allocation8 + $0x10] sm:$0xf0] }
  0x64   :  { %756 = vmatmul.bf16.vlgmr.msrb.gmra.mxu1 %v4295_v42  ;;  %v3070_v22 = vor.u32 %v3829_v14, %v3069_v13  ;;  %v3869_v13 = vld [vmem:[#allocation8 + $0x2ec] sm:$0xf0]  ;;  %v3827_v35 = vld [vmem:[#allocation8 + $0x1a4] sm:$0xf]  ;;  %v3071_v36 = vld [vmem:[#allocation8 + $0x1b0] sm:$0xf0] }
  0x65   :  { %800 = vmatpush.bf16.msra.mxu1 %v2774_v12  ;;  %764 = vmatpush.bf16.msra.mxu3 %v2722_v15  ;;  %v2835_v12 = vld [vmem:[#allocation5 + $0x278] sm:$0xf0]  ;;  %v2694_v15 = vor.u32 %v3732_v6, %v2691_v7  ;;  %v3005_v7 = vld [vmem:[#allocation8 + $0x120] sm:$0xf]  ;;  %v3074_v37 = vor.u32 %v3827_v35, %v3071_v36  ;;  %v3823_v41 = vld [vmem:[#allocation8 + $0x184] sm:$0xf] }
  0x66   :  { %795 = vmatmul.bf16.vlgmr.msrb.gmra.mxu2 %v4295_v42  ;;  %v2838_v19 = vor.u32 %v3768_v8, %v2835_v12  ;;  %v3789_v42 = vld [vmem:[#allocation8 + $0x6c] sm:$0xf0]  ;;  %v3229_v12 = vld [vmem:[#allocation8 + $0x2e0] sm:$0xf] }
  0x67   :  { %781 = vmatpush.bf16.msra.mxu0 %v2786_v25  ;;  %1625 = vmatpush.bf16.msra.mxu2 %v3102_v62  ;;  %v3825_v25 = vld [vmem:[#allocation8 + $0x18c] sm:$0xf0]  ;;  %v2910_v29 = vor.u32 %v3789_v42, %v2909_v21  ;;  %v3795_v62 = vld [vmem:[#allocation8 + $0xa4] sm:$0xf]  ;;  %v3230_v14 = vor.u32 %v3869_v13, %v3229_v12  ;;  %v3103_v42 = vld [vmem:[#allocation8 + $0x1f0] sm:$0xf0] }
  0x68   :  { %v2946_v0 = vor.u32 %v3795_v62, %v2943_v63  ;;  %v3813_v8 = vld [vmem:[#allocation8 + $0x12c] sm:$0xf0]  ;;  %v3023_v62 = vld [vmem:[#allocation8 + $0x150] sm:$0xf0]  ;;  %v3277_v36 = vld [vmem:[#allocation8 + $0x340] sm:$0xf] }
  0x69   :  { %801 = vmatpush.bf16.msra.mxu1 %v2758_v24  ;;  %765 = vmatpush.bf16.msra.mxu3 %v2706_v26  ;;  %v3053_v24 = vld [vmem:[#allocation8 + $0x180] sm:$0xf]  ;;  %v2678_v26 = vor.u32 %v3728_v16, %v2675_v17  ;;  %v3006_v9 = vor.u32 %v3813_v8, %v3005_v7  ;;  %v3809_v16 = vld [vmem:[#allocation8 + $0x10c] sm:$0xf0]  ;;  %v3811_v8 = vld [vmem:[#allocation8 + $0x124] sm:$0xf] }
  0x6a   :  { %2857 = vmatmul.msk.bf16.vlgmr.msra.gmra.mxu0 %vm653_vm1, %v4290_v5  ;;  %v3901_v47 = vld [vmem:[#allocation8 + $0x3ec] sm:$0xf0] }
  0x6b   :  { %1612 = vmatpush.bf16.msrb.mxu0 %v2974_v48  ;;  %1626 = vmatpush.bf16.msra.mxu2 %v3086_v11  ;;  %v3021_v48 = vld [vmem:[#allocation8 + $0x140] sm:$0xf]  ;;  %v3897_v56 = vld [vmem:[#allocation8 + $0x3cc] sm:$0xf0] }
  0x6c   :  { %v3849_v59 = vld [vmem:[#allocation8 + $0x24c] sm:$0xf0] }
  0x6d   :  { %802 = vmatpush.bf16.msra.mxu1 %v2742_v34  ;;  %766 = vmatpush.bf16.msra.mxu3 %v2690_v39  ;;  %v3054_v34 = vor.u32 %v3825_v25, %v3053_v24  ;;  %v2894_v39 = vor.u32 %v3785_v33, %v2893_v32  ;;  %v3865_v24 = vld [vmem:[#allocation8 + $0x2cc] sm:$0xf0]  ;;  %v3197_v32 = vld [vmem:[#allocation8 + $0x2a0] sm:$0xf] }
  0x6e   :  { %v3214_v25 = vor.u32 %v3865_v24, %v3213_v23  ;;  %v3861_v33 = vld [vmem:[#allocation8 + $0x2ac] sm:$0xf0] }
  0x6f   :  { %1613 = vmatpush.bf16.msrb.mxu0 %v2958_v53  ;;  %1627 = vmatpush.bf16.msra.mxu2 %v3070_v22  ;;  %v3777_v53 = vld [vmem:[#allocation8 + $0xc] sm:$0xf0]  ;;  %v3106_v22 = vor.u32 %v3835_v20, %v3103_v42  ;;  %v2991_v42 = vld [vmem:[#allocation8 + $0x110] sm:$0xf0] }
  0x70   :  { %v2862_v57 = vor.u32 %v3777_v53, %v2861_v52  ;;  %v3819_v52 = vld [vmem:[#allocation8 + $0x164] sm:$0xf]  ;;  %v3039_v53 = vld [vmem:[#allocation8 + $0x170] sm:$0xf0]  ;;  %v3889_v12 = vld [vmem:[#allocation8 + $0x38c] sm:$0xf0] }
  0x71   :  { %803 = vmatpush.bf16.msra.mxu1 %v2726_v50  ;;  %767 = vmatpush.bf16.msra.mxu3 %v2674_v54  ;;  %v2878_v50 = vor.u32 %v3781_v44, %v2877_v43  ;;  %v3022_v54 = vor.u32 %v3817_v49, %v3021_v48  ;;  %v3055_v43 = vld [vmem:[#allocation8 + $0x190] sm:$0xf0]  ;;  %v3357_v44 = vld [vmem:[#allocation8 + $0x3e0] sm:$0xf]  ;;  %v3042_v55 = vor.u32 %v3819_v52, %v3039_v53  ;;  %v3877_v52 = vld [vmem:[#allocation8 + $0x32c] sm:$0xf0] }
  0x72   :  { %v3358_v48 = vor.u32 %v3901_v47, %v3357_v44  ;;  %v3165_v49 = vld [vmem:[#allocation8 + $0x260] sm:$0xf]  ;;  %v3859_v44 = vld [vmem:[#allocation8 + $0x2a4] sm:$0xf] }
  0x73   :  { %1614 = vmatpush.bf16.msrb.mxu0 %v2942_v2  ;;  %1628 = vmatpush.bf16.msra.mxu2 %v3054_v34  ;;  %v3198_v34 = vor.u32 %v3861_v33, %v3197_v32  ;;  %v3215_v32 = vld [vmem:[#allocation8 + $0x2d0] sm:$0xf0] }
  0x75   :  { %804 = vmatpush.bf16.msra.mxu1 %v2710_v1  ;;  %768 = vmatpush.bf16.msra.mxu3 %v2658_v3  ;;  %v2927_v1 = vld [vmem:[#allocation8 + $0x90] sm:$0xf0]  ;;  %v3787_v3 = vld [vmem:[#allocation8 + $0x64] sm:$0xf] }
  0x77   :  { %1615 = vmatpush.bf16.msrb.mxu0 %v2926_v18  ;;  %1629 = vmatpush.bf16.msra.mxu2 %v3038_v46  ;;  %v3779_v18 = vld [vmem:[#allocation8 + $0x24] sm:$0xf]  ;;  %v3058_v46 = vor.u32 %v3823_v41, %v3055_v43  ;;  %v2965_v41 = vld [vmem:[#allocation8 + $0xc8] sm:$0xf] }
  0x78   :  { %769 = vmatmul.bf16.vlgmr.msra.gmra.mxu3 %v4297_v45 }
  0x79   :  { %816 = vmatpush.bf16.msrb.mxu3 %v668_v4  ;;  %805 = vmatpush.bf16.msra.mxu1 %v2694_v15  ;;  %v2911_v4 = vld [vmem:[#allocation8 + $0x70] sm:$0xf0]  ;;  %v2989_v15 = vld [vmem:[#allocation8 + $0x100] sm:$0xf] }
  0x7a   :  { %v2914_v6 = vor.u32 %v3787_v3, %v2911_v4  ;;  %v2990_v17 = vor.u32 %v3809_v16, %v2989_v15  ;;  %v3133_v3 = vld [vmem:[#allocation8 + $0x220] sm:$0xf]  ;;  %v3845_v4 = vld [vmem:[#allocation8 + $0x22c] sm:$0xf0] }
  0x7b   :  { %1616 = vmatpush.bf16.msrb.mxu0 %v2910_v29  ;;  %1630 = vmatpush.bf16.msra.mxu2 %v3022_v54  ;;  %v3341_v54 = vld [vmem:[#allocation8 + $0x3c0] sm:$0xf]  ;;  %v3841_v15 = vld [vmem:[#allocation8 + $0x20c] sm:$0xf0] }
  0x7d   :  { %817 = vmatpush.bf16.msrb.mxu3 %v2838_v19  ;;  %806 = vmatpush.bf16.msra.mxu1 %v2678_v26  ;;  %v2879_v19 = vld [vmem:[#allocation8 + $0x30] sm:$0xf0]  ;;  %v3775_v26 = vld [vmem:[#allocation8 + $0x4] sm:$0xf] }
  0x7e   :  { %v2882_v21 = vor.u32 %v3779_v18, %v2879_v19  ;;  %v2866_v29 = vor.u32 %v3775_v26, %v2863_v27  ;;  %v3231_v18 = vld [vmem:[#allocation8 + $0x2f0] sm:$0xf0]  ;;  %v3885_v26 = vld [vmem:[#allocation8 + $0x36c] sm:$0xf0] }
  0x7f   :  { %1617 = vmatpush.bf16.msrb.mxu0 %v2894_v39  ;;  %1631 = vmatpush.bf16.msra.mxu2 %v3006_v9  ;;  %v3857_v39 = vld [vmem:[#allocation8 + $0x28c] sm:$0xf0]  ;;  %v3007_v9 = vld [vmem:[#allocation8 + $0x130] sm:$0xf0] }
  0x81   :  { %818 = vmatpush.bf16.msrb.mxu3 %v2822_v30  ;;  %807 = vmatpush.bf16.msra.mxu1 %v2662_v38  ;;  %v3087_v30 = vld [vmem:[#allocation8 + $0x1d0] sm:$0xf0]  ;;  %v3181_v38 = vld [vmem:[#allocation8 + $0x280] sm:$0xf] }
  0x82   :  { %v3090_v31 = vor.u32 %v3831_v28, %v3087_v30 }
  0x83   :  { %1618 = vmatpush.bf16.msrb.mxu0 %v2878_v50  ;;  %1632 = vmatpush.bf16.msra.mxu2 %v2990_v17  ;;  %v3853_v50 = vld [vmem:[#allocation8 + $0x26c] sm:$0xf0]  ;;  %v3867_v17 = vld [vmem:[#allocation8 + $0x2e4] sm:$0xf] }
  0x84   :  { %808 = vmatmul.bf16.vlgmr.msra.gmra.mxu1 %v4297_v45  ;;  %v3791_v45 = vld [vmem:[#allocation8 + $0x84] sm:$0xf]  ;;  %v3234_v20 = vor.u32 %v3867_v17, %v3231_v18  ;;  %v3790_v17 = vld [vmem:[#allocation8 + $0x74] sm:$0xf0] }
  0x85   :  { %819 = vmatpush.bf16.msrb.mxu3 %v2806_v40  ;;  %v2930_v2 = vor.u32 %v3791_v45, %v2927_v1  ;;  %v3182_v40 = vor.u32 %v3857_v39, %v3181_v38  ;;  %1651 = vmatpush.bf16.msrb.mxu1 %v3358_v48  ;;  %v3893_v45 = vld [vmem:[#allocation8 + $0x3ac] sm:$0xf0]  ;;  %v4315_v1 = vld [vmem:[#allocation7] sm:$0xf]  ;;  %v3802_v48 = vld [vmem:[#allocation8 + $0xd4] sm:$0xf0] }
  0x87   :  { %1619 = vmatpush.bf16.msrb.mxu0 %v2862_v57  ;;  %1677 = vmatpush.bf16.msrb.mxu2 %v3106_v22  ;;  %v3342_v57 = vor.u32 %v3897_v56, %v3341_v54  ;;  %v2966_v54 = vor.u32 %v3802_v48, %v2965_v41  ;;  %v3855_v56 = vld [vmem:[#allocation8 + $0x284] sm:$0xf] }
  0x89   :  { %820 = vmatpush.bf16.msrb.mxu3 %v2790_v51  ;;  %v3166_v51 = vor.u32 %v3853_v50, %v3165_v49  ;;  %1652 = vmatpush.bf16.msrb.mxu1 %v3342_v57  ;;  %v3183_v57 = vld [vmem:[#allocation8 + $0x290] sm:$0xf0] }
  0x8b   :  { %1664 = vmatpush.bf16.msra.mxu0 %v2978_v58  ;;  %1678 = vmatpush.bf16.msrb.mxu2 %v3090_v31  ;;  %v3149_v58 = vld [vmem:[#allocation8 + $0x240] sm:$0xf]  ;;  %v3863_v31 = vld [vmem:[#allocation8 + $0x2c4] sm:$0xf] }
  0x8c   :  { %2858 = vmatmul.msk.bf16.vlgmr.msrb.gmra.mxu3 %vm653_vm1, %v4290_v5  ;;  %v3783_v5 = vld [vmem:[#allocation8 + $0x44] sm:$0xf]  ;;  %v3150_v60 = vor.u32 %v3849_v59, %v3149_v58  ;;  %v3218_v35 = vor.u32 %v3863_v31, %v3215_v32  ;;  %v3798_v58 = vld [vmem:[#allocation8 + $0xb4] sm:$0xf0]  ;;  %v3186_v59 = vor.u32 %v3855_v56, %v3183_v57  ;;  %v2869_v56 = vld [vmem:[#allocation8 + $0x8] sm:$0xf] }
  0x8d   :  { %v2898_v11 = vor.u32 %v3783_v5, %v2895_v10  ;;  %1638 = vmatpush.bf16.msra.mxu3 %v3230_v14  ;;  %v229_v5 = vperm.slane %v4315_v1, 0  ;;  %v3010_v10 = vor.u32 %v3811_v8, %v3007_v9  ;;  %v3117_v14 = vld [vmem:[#allocation8 + $0x200] sm:$0xf]  ;;  %v3887_v32 = vld [vmem:[#allocation8 + $0x384] sm:$0xf] }
  0x8e   :  { %v3118_v16 = vor.u32 %v3841_v15, %v3117_v14  ;;  %v3847_v14 = vld [vmem:[#allocation8 + $0x244] sm:$0xf]  ;;  %v3151_v15 = vld [vmem:[#allocation8 + $0x250] sm:$0xf0]  ;;  %v3778_v57 = vld [vmem:[#allocation8 + $0x14] sm:$0xf0] }
  0x8f   :  { %1665 = vmatpush.bf16.msra.mxu0 %v2962_v61  ;;  %1679 = vmatpush.bf16.msrb.mxu2 %v3074_v37  ;;  %v3815_v61 = vld [vmem:[#allocation8 + $0x144] sm:$0xf]  ;;  %v3881_v37 = vld [vmem:[#allocation8 + $0x34c] sm:$0xf0]  ;;  %v3154_v18 = vor.u32 %v3847_v14, %v3151_v15 }
  0x90   :  { %v3026_v63 = vor.u32 %v3815_v61, %v3023_v62  ;;  %v3278_v38 = vor.u32 %v3881_v37, %v3277_v36  ;;  %v3873_v61 = vld [vmem:[#allocation8 + $0x30c] sm:$0xf0]  ;;  %v3839_v37 = vld [vmem:[#allocation8 + $0x204] sm:$0xf] }
  0x91   :  { %1639 = vmatpush.bf16.msra.mxu3 %v3214_v25  ;;  %v3293_v25 = vld [vmem:[#allocation8 + $0x360] sm:$0xf] }
  0x92   :  { %v3294_v27 = vor.u32 %v3885_v26, %v3293_v25  ;;  %v2901_v26 = vld [vmem:[#allocation8 + $0x48] sm:$0xf] }
  0x93   :  { %1666 = vmatpush.bf16.msra.mxu0 %v2946_v0  ;;  %1680 = vmatpush.bf16.msrb.mxu2 %v3058_v46  ;;  %v3325_v0 = vld [vmem:[#allocation8 + $0x3a0] sm:$0xf]  ;;  %v3199_v46 = vld [vmem:[#allocation8 + $0x2b0] sm:$0xf0] }
  0x94   :  { %v3202_v50 = vor.u32 %v3859_v44, %v3199_v46  ;;  %v3109_v44 = vld [vmem:[#allocation8 + $0x1e8] sm:$0xf]  ;;  %v3838_v46 = vld [vmem:[#allocation8 + $0x1f4] sm:$0xf0] }
  0x95   :  { %1640 = vmatpush.bf16.msra.mxu3 %v3198_v34  ;;  %v3806_v34 = vld [vmem:[#allocation8 + $0xf4] sm:$0xf0] }
  0x97   :  { %1667 = vmatpush.bf16.msra.mxu0 %v2930_v2  ;;  %1681 = vmatpush.bf16.msrb.mxu2 %v3042_v55  ;;  %v3326_v2 = vor.u32 %v3893_v45, %v3325_v0  ;;  %v2949_v55 = vld [vmem:[#allocation8 + $0xa8] sm:$0xf]  ;;  %v3359_v0 = vld [vmem:[#allocation8 + $0x3f0] sm:$0xf0] }
  0x98   :  { %v2950_v45 = vor.u32 %v3798_v58, %v2949_v55  ;;  %v3093_v58 = vld [vmem:[#allocation8 + $0x1c8] sm:$0xf] }
  0x99   :  { %1641 = vmatpush.bf16.msra.mxu3 %v3182_v40  ;;  %1653 = vmatpush.bf16.msrb.mxu1 %v3326_v2 }
  0x9b   :  { %1668 = vmatpush.bf16.msra.mxu0 %v2914_v6  ;;  %v3134_v6 = vor.u32 %v3845_v4, %v3133_v3  ;;  %1682 = vmatpush.bf16.msrb.mxu2 %v3026_v63  ;;  %v3899_v63 = vld [vmem:[#allocation8 + $0x3e4] sm:$0xf]  ;;  %v3167_v4 = vld [vmem:[#allocation8 + $0x270] sm:$0xf0] }
  0x9c   :  { %v3362_v2 = vor.u32 %v3899_v63, %v3359_v0  ;;  %v3851_v3 = vld [vmem:[#allocation8 + $0x264] sm:$0xf] }
  0x9d   :  { %1642 = vmatpush.bf16.msra.mxu3 %v3166_v51  ;;  %v3261_v51 = vld [vmem:[#allocation8 + $0x320] sm:$0xf]  ;;  %v3170_v9 = vor.u32 %v3851_v3, %v3167_v4  ;;  %v3879_v0 = vld [vmem:[#allocation8 + $0x344] sm:$0xf] }
  0x9e   :  { %v3262_v53 = vor.u32 %v3877_v52, %v3261_v51 }
  0x9f   :  { %1669 = vmatpush.bf16.msra.mxu0 %v2898_v11  ;;  %v3309_v11 = vld [vmem:[#allocation8 + $0x380] sm:$0xf]  ;;  %1683 = vmatpush.bf16.msrb.mxu2 %v3010_v10  ;;  %v3895_v10 = vld [vmem:[#allocation8 + $0x3c4] sm:$0xf] }
  0xa0   :  { %v3310_v13 = vor.u32 %v3889_v12, %v3309_v11  ;;  %v3343_v11 = vld [vmem:[#allocation8 + $0x3d0] sm:$0xf0] }
  0xa1   :  { %1643 = vmatpush.bf16.msra.mxu3 %v3150_v60  ;;  %v3245_v60 = vld [vmem:[#allocation8 + $0x300] sm:$0xf] }
  0xa2   :  { %1654 = vmatpush.bf16.msrb.mxu1 %v3310_v13  ;;  %v3246_v62 = vor.u32 %v3873_v61, %v3245_v60  ;;  %v3346_v13 = vor.u32 %v3895_v10, %v3343_v11  ;;  %v3834_v60 = vld [vmem:[#allocation8 + $0x1d4] sm:$0xf0]  ;;  %v3804_v61 = vld [vmem:[#allocation8 + $0xec] sm:$0xf]  ;;  %v3875_v11 = vld [vmem:[#allocation8 + $0x324] sm:$0xf] }
  0xa3   :  { %1670 = vmatpush.bf16.msra.mxu0 %v2882_v21  ;;  %v3807_v21 = vld [vmem:[#allocation8 + $0x104] sm:$0xf]  ;;  %v3094_v4 = vor.u32 %v3834_v60, %v3093_v58  ;;  %v2887_v58 = vld [vmem:[#allocation8 + $0x38] sm:$0xf0] }
  0xa4   :  { %v2994_v24 = vor.u32 %v3807_v21, %v2991_v42  ;;  %v3327_v21 = vld [vmem:[#allocation8 + $0x3b0] sm:$0xf0] }
  0xa5   :  { %1644 = vmatpush.bf16.msra.mxu3 %v3134_v6  ;;  %v2933_v6 = vld [vmem:[#allocation8 + $0x88] sm:$0xf] }
  0xa6   :  { %1684 = vmatpush.bf16.msrb.mxu2 %v2994_v24  ;;  %1655 = vmatpush.bf16.msrb.mxu1 %v3294_v27  ;;  %v3135_v24 = vld [vmem:[#allocation8 + $0x230] sm:$0xf0]  ;;  %v3786_v27 = vld [vmem:[#allocation8 + $0x54] sm:$0xf0] }
  0xa7   :  { %1671 = vmatpush.bf16.msra.mxu0 %v2866_v29  ;;  %v2981_v29 = vld [vmem:[#allocation8 + $0xe8] sm:$0xf] }
  0xa8   :  { %v2982_v40 = vor.u32 %v3806_v34, %v2981_v29 }
  0xa9   :  { %1645 = vmatpush.bf16.msra.mxu3 %v3118_v16  ;;  %v2917_v16 = vld [vmem:[#allocation8 + $0x68] sm:$0xf] }
  0xaa   :  { %1656 = vmatpush.bf16.msrb.mxu1 %v3278_v38  ;;  %v2918_v42 = vor.u32 %v3790_v17, %v2917_v16  ;;  %v3119_v38 = vld [vmem:[#allocation8 + $0x210] sm:$0xf0]  ;;  %v3061_v16 = vld [vmem:[#allocation8 + $0x188] sm:$0xf]  ;;  %v3826_v17 = vld [vmem:[#allocation8 + $0x194] sm:$0xf0] }
  0xab   :  { %v3122_v41 = vor.u32 %v3839_v37, %v3119_v38 }
  0xad   :  { %1690 = vmatpush.bf16.msrb.mxu3 %v3234_v20  ;;  %v3891_v20 = vld [vmem:[#allocation8 + $0x3a4] sm:$0xf] }
  0xae   :  { %1657 = vmatpush.bf16.msrb.mxu1 %v3262_v53 }
  0xb1   :  { %1691 = vmatpush.bf16.msrb.mxu3 %v3218_v35  ;;  %v2902_v35 = vor.u32 %v3786_v27, %v2901_v26  ;;  %v3822_v26 = vld [vmem:[#allocation8 + $0x174] sm:$0xf0]  ;;  %v3792_v27 = vld [vmem:[#allocation8 + $0x8c] sm:$0xf] }
  0xb2   :  { %1658 = vmatpush.bf16.msrb.mxu1 %v3246_v62  ;;  %v2983_v62 = vld [vmem:[#allocation8 + $0xf8] sm:$0xf0] }
  0xb5   :  { %1692 = vmatpush.bf16.msrb.mxu3 %v3202_v50  ;;  %v3295_v50 = vld [vmem:[#allocation8 + $0x370] sm:$0xf0] }
  0xb6   :  { %1703 = vmatpush.bf16.msra.mxu1 %v3362_v2  ;;  %v2870_v2 = vor.u32 %v3778_v57, %v2869_v56  ;;  %v3810_v56 = vld [vmem:[#allocation8 + $0x114] sm:$0xf0]  ;;  %v3780_v57 = vld [vmem:[#allocation8 + $0x2c] sm:$0xf] }
  0xb9   :  { %1693 = vmatpush.bf16.msrb.mxu3 %v3186_v59 }
  0xba   :  { %1704 = vmatpush.bf16.msra.mxu1 %v3346_v13 }
  0xbb   :  { %v705_v7 = vpop.f32.mrf.mxu3 }
  0xbd   :  { %1694 = vmatpush.bf16.msrb.mxu3 %v3170_v9  ;;  %v3800_v9 = vld [vmem:[#allocation8 + $0xcc] sm:$0xf] }
  0xbf   :  { %v679_v19 = vpop.f32.mrf.mxu0 }
  0xc0   :  { %v680_v22 = vadd.f32 %v679_v19, %v229_v5  ;;  %v230_v19 = vperm.slane %v4315_v1, 1 }
  0xc1   :  { %v692_v23 = vpop.f32.mrf.mxu1  ;;  %1695 = vmatpush.bf16.msrb.mxu3 %v3154_v18  ;;  %v3796_v18 = vld [vmem:[#allocation8 + $0xac] sm:$0xf] }
  0xc2   :  { %v693_v28 = vadd.f32 %v692_v23, %v680_v22  ;;  %v3330_v22 = vor.u32 %v3891_v20, %v3327_v21  ;;  %v3843_v23 = vld [vmem:[#allocation8 + $0x224] sm:$0xf] }
  0xc3   :  { %v707_v30 = vpop.f32.mrf.mxu3  ;;  %v3138_v29 = vor.u32 %v3843_v23, %v3135_v24  ;;  %v3871_v21 = vld [vmem:[#allocation8 + $0x304] sm:$0xf]  ;;  %v3062_v23 = vor.u32 %v3826_v17, %v3061_v16  ;;  %v3862_v16 = vld [vmem:[#allocation8 + $0x2b4] sm:$0xf0] }
  0xc4   :  { %v706_v33 = vadd.f32 %v705_v7, %v693_v28  ;;  %v3794_v7 = vld [vmem:[#allocation8 + $0x94] sm:$0xf0]  ;;  %1705 = vmatpush.bf16.msra.mxu1 %v3330_v22 }
  0xc5   :  { %v2934_v12 = vor.u32 %v3794_v7, %v2933_v6  ;;  %1696 = vmatpush.bf16.msrb.mxu3 %v3138_v29  ;;  %v2986_v6 = vor.u32 %v3804_v61, %v2983_v62  ;;  %v3077_v7 = vld [vmem:[#allocation8 + $0x1a8] sm:$0xf]  ;;  %v231_v29 = vperm.slane %v4315_v1, 2  ;;  %v3836_v62 = vld [vmem:[#allocation8 + $0x1ec] sm:$0xf] }
  0xc6   :  { %v826_v39 = vmax.f32 %v706_v33, 0.0  ;;  %v3311_v33 = vld [vmem:[#allocation8 + $0x390] sm:$0xf0] }
  0xc7   :  { %v681_v43 = vpop.f32.mrf.mxu0  ;;  %v3314_v36 = vor.u32 %v3887_v32, %v3311_v33  ;;  %v3029_v33 = vld [vmem:[#allocation8 + $0x148] sm:$0xf] }
  0xc8   :  { %v4318_v47 = vpack.c.bf16 %v826_v39, %v826_v39  ;;  %v2885_v39 = vld [vmem:[#allocation8 + $0x28] sm:$0xf] }
  0xc9   :  { %v694_v49 = vpop.f32.mrf.mxu1  ;;  %1706 = vmatpush.bf16.msra.mxu1 %v3314_v36  ;;  %1697 = vmatpush.bf16.msrb.mxu3 %v3122_v41  ;;  %v2919_v36 = vld [vmem:[#allocation8 + $0x78] sm:$0xf0] }
  0xca   :  { %1620 = vmatmul.bf16.vlgmr.msrb.gmra.mxu0 %v4318_v47  ;;  %v731_v5 = vpop.f32.mrf.mxu2  ;;  %v3883_v49 = vld [vmem:[#allocation8 + $0x364] sm:$0xf] }
  0xcb   :  { %1716 = vmatpush.bf16.msrb.mxu0 %v2982_v40  ;;  %v3782_v40 = vld [vmem:[#allocation8 + $0x34] sm:$0xf0]  ;;  %v3298_v53 = vor.u32 %v3883_v49, %v3295_v50 }
  0xcc   :  { %v2886_v52 = vor.u32 %v3782_v40, %v2885_v39  ;;  %v3013_v40 = vld [vmem:[#allocation8 + $0x128] sm:$0xf] }
  0xcd   :  { %1707 = vmatpush.bf16.msra.mxu1 %v3298_v53 }
  0xcf   :  { %1717 = vmatpush.bf16.msrb.mxu0 %v2966_v54  ;;  %v3110_v54 = vor.u32 %v3838_v46, %v3109_v44  ;;  %v3784_v44 = vld [vmem:[#allocation8 + $0x4c] sm:$0xf]  ;;  %v2903_v46 = vld [vmem:[#allocation8 + $0x58] sm:$0xf0] }
  0xd0   :  { %v2906_v53 = vor.u32 %v3784_v44, %v2903_v46  ;;  %v3157_v44 = vld [vmem:[#allocation8 + $0x248] sm:$0xf]  ;;  %v3850_v46 = vld [vmem:[#allocation8 + $0x254] sm:$0xf0] }
  0xd2   :  { %v733_v31 = vpop.f32.mrf.mxu2 }
  0xd3   :  { %v744_v8 = vpop.f32.mrf.mxu0  ;;  %1718 = vmatpush.bf16.msrb.mxu0 %v2950_v45  ;;  %v3279_v45 = vld [vmem:[#allocation8 + $0x350] sm:$0xf0] }
  0xd4   :  { %v3282_v3 = vor.u32 %v3879_v0, %v3279_v45  ;;  %v3111_v0 = vld [vmem:[#allocation8 + $0x1f8] sm:$0xf0]  ;;  %v232_v45 = vperm.slane %v4315_v1, 3 }
  0xd6   :  { %1708 = vmatpush.bf16.msra.mxu1 %v3282_v3 }
  0xd7   :  { %1719 = vmatpush.bf16.msrb.mxu0 %v2934_v12  ;;  %v3263_v12 = vld [vmem:[#allocation8 + $0x330] sm:$0xf0] }
  0xd8   :  { %v3266_v13 = vor.u32 %v3875_v11, %v3263_v12  ;;  %v3832_v11 = vld [vmem:[#allocation8 + $0x1cc] sm:$0xf]  ;;  %v3095_v12 = vld [vmem:[#allocation8 + $0x1d8] sm:$0xf0] }
  0xd9   :  { %v3098_v17 = vor.u32 %v3832_v11, %v3095_v12  ;;  %v3301_v11 = vld [vmem:[#allocation8 + $0x368] sm:$0xf]  ;;  %v3886_v12 = vld [vmem:[#allocation8 + $0x374] sm:$0xf0] }
  0xda   :  { %1672 = vmatmul.bf16.vlgmr.msra.gmra.mxu0 %v4318_v47  ;;  %1709 = vmatpush.bf16.msra.mxu1 %v3266_v13 }
  0xdb   :  { %v718_v25 = vpop.f32.mrf.mxu3  ;;  %v746_v28 = vpop.f32.mrf.mxu0  ;;  %1720 = vmatpush.bf16.msrb.mxu0 %v2918_v42  ;;  %v3247_v42 = vld [vmem:[#allocation8 + $0x310] sm:$0xf0] }
  0xdc   :  { %v719_v30 = vadd.f32 %v718_v25, %v230_v19  ;;  %v2951_v19 = vld [vmem:[#allocation8 + $0xb8] sm:$0xf0]  ;;  %v3250_v22 = vor.u32 %v3871_v21, %v3247_v42  ;;  %v3045_v25 = vld [vmem:[#allocation8 + $0x168] sm:$0xf] }
  0xdd   :  { %v2954_v24 = vor.u32 %v3796_v18, %v2951_v19  ;;  %v2935_v28 = vld [vmem:[#allocation8 + $0x98] sm:$0xf0]  ;;  %v3046_v31 = vor.u32 %v3822_v26, %v3045_v25  ;;  %v3828_v19 = vld [vmem:[#allocation8 + $0x1ac] sm:$0xf] }
  0xde   :  { %v732_v34 = vadd.f32 %v731_v5, %v719_v30  ;;  %v2967_v5 = vld [vmem:[#allocation8 + $0xd8] sm:$0xf0]  ;;  %1710 = vmatpush.bf16.msra.mxu1 %v3250_v22  ;;  %v2938_v32 = vor.u32 %v3792_v27, %v2935_v28  ;;  %v3189_v22 = vld [vmem:[#allocation8 + $0x288] sm:$0xf]  ;;  %v3824_v26 = vld [vmem:[#allocation8 + $0x18c] sm:$0xf] }
  0xdf   :  { %1721 = vmatpush.bf16.msrb.mxu0 %v2902_v35  ;;  %v2970_v15 = vor.u32 %v3800_v9, %v2967_v5  ;;  %v3788_v35 = vld [vmem:[#allocation8 + $0x6c] sm:$0xf]  ;;  %v3114_v9 = vor.u32 %v3836_v62, %v3111_v0  ;;  %v3063_v27 = vld [vmem:[#allocation8 + $0x198] sm:$0xf0]  ;;  %v3317_v0 = vld [vmem:[#allocation8 + $0x388] sm:$0xf] }
  0xe0   :  { %v745_v43 = vadd.f32 %v744_v8, %v732_v34  ;;  %v3830_v8 = vld [vmem:[#allocation8 + $0x1b4] sm:$0xf0]  ;;  %v2922_v39 = vor.u32 %v3788_v35, %v2919_v36  ;;  %v3776_v5 = vld [vmem:[#allocation8 + $0xc] sm:$0xf]  ;;  %v3066_v35 = vor.u32 %v3824_v26, %v3063_v27  ;;  %v3191_v26 = vld [vmem:[#allocation8 + $0x298] sm:$0xf0] }
  0xe1   :  { %v4323_v48 = vpop.f32.mrf.mxu1  ;;  %v3078_v14 = vor.u32 %v3830_v8, %v3077_v7  ;;  %v3818_v34 = vld [vmem:[#allocation8 + $0x154] sm:$0xf0] }
  0xe2   :  { %v827_v51 = vmax.f32 %v745_v43, 0.0  ;;  %v758_v37 = vadd.f32 %v4323_v48, %v231_v29  ;;  %v3030_v38 = vor.u32 %v3818_v34, %v3029_v33  ;;  %v3814_v43 = vld [vmem:[#allocation8 + $0x134] sm:$0xf0]  ;;  %v3237_v48 = vld [vmem:[#allocation8 + $0x2e8] sm:$0xf] }
  0xe3   :  { %v720_v55 = vpop.f32.mrf.mxu3  ;;  %1722 = vmatpush.bf16.msrb.mxu0 %v2886_v52  ;;  %v3014_v52 = vor.u32 %v3814_v43, %v3013_v40  ;;  %v3866_v7 = vld [vmem:[#allocation8 + $0x2d4] sm:$0xf0] }
  0xe4   :  { %v4325_v59 = vpack.c.bf16 %v827_v51, %v827_v51  ;;  %v2997_v55 = vld [vmem:[#allocation8 + $0x108] sm:$0xf]  ;;  %v3854_v33 = vld [vmem:[#allocation8 + $0x274] sm:$0xf0] }
  0xe5   :  { %v3898_v43 = vld [vmem:[#allocation8 + $0x3d4] sm:$0xf0] }
  0xe6   :  { %1633 = vmatmul.bf16.vlgmr.msra.gmra.mxu2 %v4325_v59 }
  0xe7   :  { %v4327_v63 = vpop.f32.mrf.mxu0  ;;  %1729 = vmatpush.bf16.msra.mxu2 %v3110_v54  ;;  %1723 = vmatpush.bf16.msrb.mxu0 %v2870_v2  ;;  %v3870_v54 = vld [vmem:[#allocation8 + $0x2f4] sm:$0xf0] }
  0xe8   :  { %v3238_v2 = vor.u32 %v3870_v54, %v3237_v48  ;;  %v3333_v48 = vld [vmem:[#allocation8 + $0x3a8] sm:$0xf]  ;;  %v3894_v54 = vld [vmem:[#allocation8 + $0x3b4] sm:$0xf0] }
  0xe9   :  { %v759_v10 = vpop.f32.mrf.mxu1  ;;  %v796_v30 = vpop.f32.mrf.mxu2 }
  0xea   :  { %1724 = vmatmul.bf16.vlgmr.msrb.gmra.mxu0 %v4318_v47  ;;  %v2871_v10 = vld [vmem:[#allocation8 + $0x18] sm:$0xf0]  ;;  %v797_v13 = vadd.f32 %v796_v30, %v232_v45  ;;  %v3365_v30 = vld [vmem:[#allocation8 + $0x3e8] sm:$0xf]  ;;  %v3890_v45 = vld [vmem:[#allocation8 + $0x394] sm:$0xf0] }
  0xeb   :  { %1730 = vmatpush.bf16.msra.mxu2 %v3094_v4  ;;  %1768 = vmatpush.bf16.msra.mxu0 %v2986_v6  ;;  %v2890_v4 = vor.u32 %v3780_v57, %v2887_v58  ;;  %v3221_v6 = vld [vmem:[#allocation8 + $0x2c8] sm:$0xf]  ;;  %v3334_v58 = vor.u32 %v3894_v54, %v3333_v48  ;;  %v3319_v48 = vld [vmem:[#allocation8 + $0x398] sm:$0xf0]  ;;  %v3840_v54 = vld [vmem:[#allocation8 + $0x20c] sm:$0xf] }
  0xec   :  { %v3222_v1 = vor.u32 %v3866_v7, %v3221_v6  ;;  %v3868_v6 = vld [vmem:[#allocation8 + $0x2ec] sm:$0xf]  ;;  %v3239_v7 = vld [vmem:[#allocation8 + $0x2f8] sm:$0xf0] }
  0xef   :  { %v785_v20 = vpop.f32.mrf.mxu0  ;;  %1731 = vmatpush.bf16.msra.mxu2 %v3078_v14  ;;  %1769 = vmatpush.bf16.msra.mxu0 %v2970_v15  ;;  %v2874_v14 = vor.u32 %v3776_v5, %v2871_v10  ;;  %v3205_v15 = vld [vmem:[#allocation8 + $0x2a8] sm:$0xf]  ;;  %v2999_v5 = vld [vmem:[#allocation8 + $0x118] sm:$0xf0] }
  0xf0   :  { %v3079_v20 = vld [vmem:[#allocation8 + $0x1b8] sm:$0xf0]  ;;  %v3206_v42 = vor.u32 %v3862_v16, %v3205_v15  ;;  %v3302_v16 = vor.u32 %v3886_v12, %v3301_v11  ;;  %v3421_v12 = vld [vmem:[#allocation11 + $0x60] sm:$0xf] }
  0xf1   :  { %v798_v50 = vpop.f32.mrf.mxu2  ;;  %v3223_v15 = vld [vmem:[#allocation8 + $0x2d8] sm:$0xf0] }
  0xf3   :  { %1732 = vmatpush.bf16.msra.mxu2 %v3062_v23  ;;  %1770 = vmatpush.bf16.msra.mxu0 %v2954_v24  ;;  %v3858_v23 = vld [vmem:[#allocation8 + $0x294] sm:$0xf0]  ;;  %v3082_v24 = vor.u32 %v3828_v19, %v3079_v20  ;;  %v3860_v20 = vld [vmem:[#allocation8 + $0x2ac] sm:$0xf] }
  0xf4   :  { %v3190_v29 = vor.u32 %v3858_v23, %v3189_v22  ;;  %v3269_v22 = vld [vmem:[#allocation8 + $0x328] sm:$0xf]  ;;  %v3878_v23 = vld [vmem:[#allocation8 + $0x334] sm:$0xf0] }
  0xf5   :  { %v3270_v27 = vor.u32 %v3878_v23, %v3269_v22  ;;  %v3934_v22 = vld [vmem:[#allocation11 + $0xf4] sm:$0xf0] }
  0xf6   :  { %1685 = vmatmul.bf16.vlgmr.msrb.gmra.mxu2 %v4325_v59 }
  0xf7   :  { %1733 = vmatpush.bf16.msra.mxu2 %v3046_v31  ;;  %1771 = vmatpush.bf16.msra.mxu0 %v2938_v32  ;;  %v3902_v31 = vld [vmem:[#allocation8 + $0x3f4] sm:$0xf0]  ;;  %v3173_v32 = vld [vmem:[#allocation8 + $0x268] sm:$0xf] }
  0xf8   :  { %v3366_v36 = vor.u32 %v3902_v31, %v3365_v30  ;;  %v3174_v40 = vor.u32 %v3854_v33, %v3173_v32  ;;  %v3900_v31 = vld [vmem:[#allocation8 + $0x3ec] sm:$0xf]  ;;  %v3367_v32 = vld [vmem:[#allocation8 + $0x3f8] sm:$0xf0] }
  0xf9   :  { %v3852_v33 = vld [vmem:[#allocation8 + $0x26c] sm:$0xf] }
  0xfb   :  { %v770_v41 = vpop.f32.mrf.mxu3  ;;  %1734 = vmatpush.bf16.msra.mxu2 %v3030_v38  ;;  %1772 = vmatpush.bf16.msra.mxu0 %v2922_v39  ;;  %v3047_v38 = vld [vmem:[#allocation8 + $0x178] sm:$0xf0] }
  0xfc   :  { %v771_v49 = vadd.f32 %v770_v41, %v758_v37  ;;  %v3820_v37 = vld [vmem:[#allocation8 + $0x16c] sm:$0xf]  ;;  %v3349_v41 = vld [vmem:[#allocation8 + $0x3c8] sm:$0xf] }
  0xfd   :  { %v3350_v50 = vor.u32 %v3898_v43, %v3349_v41  ;;  %v3159_v41 = vld [vmem:[#allocation8 + $0x258] sm:$0xf0] }
  0xfe   :  { %v784_v51 = vadd.f32 %v4327_v63, %v771_v49  ;;  %v2998_v63 = vor.u32 %v3810_v56, %v2997_v55  ;;  %v3141_v55 = vld [vmem:[#allocation8 + $0x228] sm:$0xf]  ;;  %v3846_v56 = vld [vmem:[#allocation8 + $0x234] sm:$0xf0] }
  0xff   :  { %1735 = vmatpush.bf16.msra.mxu2 %v3014_v52  ;;  %1773 = vmatpush.bf16.msra.mxu0 %v2906_v53  ;;  %v3031_v52 = vld [vmem:[#allocation8 + $0x158] sm:$0xf0]  ;;  %v3158_v53 = vor.u32 %v3850_v46, %v3157_v44  ;;  %v3142_v62 = vor.u32 %v3846_v56, %v3141_v55  ;;  %v3892_v46 = vld [vmem:[#allocation8 + $0x3ac] sm:$0xf] }
 0x100   :  { %v828_v60 = vmax.f32 %v784_v51, 0.0  ;;  %v3816_v51 = vld [vmem:[#allocation8 + $0x14c] sm:$0xf]  ;;  %v3127_v55 = vld [vmem:[#allocation8 + $0x218] sm:$0xf0] }
 0x101   :  { %v809_v61 = vpop.f32.mrf.mxu1  ;;  %v3034_v57 = vor.u32 %v3816_v51, %v3031_v52 }
 0x102   :  { %v4336_v3 = vpack.c.bf16 %v828_v60, %v828_v60  ;;  %v810_v21 = vadd.f32 %v809_v61, %v797_v13  ;;  %v3812_v60 = vld [vmem:[#allocation8 + $0x12c] sm:$0xf]  ;;  %v3015_v61 = vld [vmem:[#allocation8 + $0x138] sm:$0xf0]  ;;  %v3242_v13 = vor.u32 %v3868_v6, %v3239_v7  ;;  %v3429_v6 = vld [vmem:[#allocation11 + $0x70] sm:$0xf] }
 0x103   :  { %v772_v8 = vpop.f32.mrf.mxu3  ;;  %1736 = vmatpush.bf16.msra.mxu2 %v2998_v63  ;;  %1774 = vmatpush.bf16.msra.mxu0 %v2890_v4  ;;  %v3842_v63 = vld [vmem:[#allocation8 + $0x214] sm:$0xf0]  ;;  %v3018_v4 = vor.u32 %v3812_v60, %v3015_v61  ;;  %v3303_v60 = vld [vmem:[#allocation8 + $0x378] sm:$0xf0] }
 0x104   :  { %1646 = vmatmul.bf16.vlgmr.msra.gmra.mxu3 %v4336_v3  ;;  %v3318_v8 = vor.u32 %v3890_v45, %v3317_v0  ;;  %v3287_v0 = vld [vmem:[#allocation8 + $0x358] sm:$0xf0] }
 0x105   :  { %1742 = vmatpush.bf16.msra.mxu3 %v3238_v2  ;;  %v3125_v2 = vld [vmem:[#allocation8 + $0x208] sm:$0xf]  ;;  %v3918_v7 = vld [vmem:[#allocation11 + $0x74] sm:$0xf0] }
 0x106   :  { %1737 = vmatmul.bf16.vlgmr.msra.gmra.mxu2 %v4325_v59  ;;  %v3126_v10 = vor.u32 %v3842_v63, %v3125_v2  ;;  %v3876_v2 = vld [vmem:[#allocation8 + $0x32c] sm:$0xf]  ;;  %v3271_v63 = vld [vmem:[#allocation8 + $0x338] sm:$0xf0] }
 0x107   :  { %1781 = vmatpush.bf16.msrb.mxu2 %v3114_v9  ;;  %1775 = vmatpush.bf16.msra.mxu0 %v2874_v14  ;;  %v3808_v9 = vld [vmem:[#allocation8 + $0x10c] sm:$0xf] }
 0x108   :  { %v3864_v14 = vld [vmem:[#allocation8 + $0x2cc] sm:$0xf] }
 0x109   :  { %v811_v18 = vpop.f32.mrf.mxu1  ;;  %1743 = vmatpush.bf16.msra.mxu3 %v3222_v1  ;;  %v3002_v1 = vor.u32 %v3808_v9, %v2999_v5  ;;  %v3226_v19 = vor.u32 %v3864_v14, %v3223_v15  ;;  %v3255_v9 = vld [vmem:[#allocation8 + $0x318] sm:$0xf0]  ;;  %v3430_v5 = vor.u32 %v3918_v7, %v3429_v6 }
 0x10a   :  { %1776 = vmatmul.bf16.vlgmr.msra.gmra.mxu0 %v4318_v47  ;;  %v3050_v47 = vor.u32 %v3820_v37, %v3047_v38  ;;  %v3882_v18 = vld [vmem:[#allocation8 + $0x354] sm:$0xf0]  ;;  %v3351_v38 = vld [vmem:[#allocation8 + $0x3d8] sm:$0xf0] }
 0x10b   :  { %1782 = vmatpush.bf16.msrb.mxu2 %v3098_v17  ;;  %v3285_v17 = vld [vmem:[#allocation8 + $0x348] sm:$0xf]  ;;  %2218 = vmatpush.bf16.msrb.mxu0 %v3430_v5  ;;  %v3914_v14 = vld [vmem:[#allocation11 + $0x54] sm:$0xf0]  ;;  %v3541_v5 = vld [vmem:[#allocation11 + $0x150] sm:$0xf] }
 0x10d   :  { %1744 = vmatpush.bf16.msra.mxu3 %v3206_v42  ;;  %v3286_v42 = vor.u32 %v3882_v18, %v3285_v17  ;;  %v3405_v17 = vld [vmem:[#allocation11 + $0x40] sm:$0xf]  ;;  %v3912_v18 = vld [vmem:[#allocation11 + $0x44] sm:$0xf0] }
 0x10f   :  { %v822_v25 = vpop.f32.mrf.mxu3  ;;  %1783 = vmatpush.bf16.msrb.mxu2 %v3082_v24 }
 0x110   :  { %v823_v28 = vadd.f32 %v822_v25, %v810_v21  ;;  %v3207_v21 = vld [vmem:[#allocation8 + $0x2b8] sm:$0xf0]  ;;  %v3856_v25 = vld [vmem:[#allocation8 + $0x28c] sm:$0xf] }
 0x111   :  { %1745 = vmatpush.bf16.msra.mxu3 %v3190_v29  ;;  %v3210_v24 = vor.u32 %v3860_v20, %v3207_v21  ;;  %v3874_v29 = vld [vmem:[#allocation8 + $0x314] sm:$0xf0]  ;;  %v3194_v30 = vor.u32 %v3856_v25, %v3191_v26  ;;  %v3406_v20 = vor.u32 %v3912_v18, %v3405_v17  ;;  %v3910_v21 = vld [vmem:[#allocation11 + $0x34] sm:$0xf0]  ;;  %v3389_v26 = vld [vmem:[#allocation11 + $0x20] sm:$0xf] }
 0x112   :  { %v829_v34 = vmax.f32 %v823_v28, 0.0  ;;  %v3253_v28 = vld [vmem:[#allocation8 + $0x308] sm:$0xf]  ;;  %v3437_v17 = vld [vmem:[#allocation11 + $0x80] sm:$0xf] }
 0x113   :  { %1784 = vmatpush.bf16.msrb.mxu2 %v3066_v35  ;;  %v3254_v35 = vor.u32 %v3874_v29, %v3253_v28  ;;  %v3932_v29 = vld [vmem:[#allocation11 + $0xe4] sm:$0xf0] }
 0x114   :  { %v4341_v39 = vpack.c.bf16 %v829_v34, %v829_v34  ;;  %1698 = vmatmul.bf16.vlgmr.msrb.gmra.mxu3 %v4336_v3  ;;  %v3175_v34 = vld [vmem:[#allocation8 + $0x278] sm:$0xf0]  ;;  %v3920_v18 = vld [vmem:[#allocation11 + $0x84] sm:$0xf0] }
 0x115   :  { %1746 = vmatpush.bf16.msra.mxu3 %v3174_v40  ;;  %v3178_v37 = vor.u32 %v3852_v33, %v3175_v34  ;;  %v3848_v40 = vld [vmem:[#allocation8 + $0x24c] sm:$0xf]  ;;  %v3477_v33 = vld [vmem:[#allocation11 + $0xd0] sm:$0xf]  ;;  %v3930_v34 = vld [vmem:[#allocation11 + $0xd4] sm:$0xf0] }
 0x116   :  { %1659 = vmatmul.bf16.vlgmr.msrb.gmra.mxu1 %v4341_v39  ;;  %v3162_v44 = vor.u32 %v3848_v40, %v3159_v41  ;;  %v3469_v40 = vld [vmem:[#allocation11 + $0xc0] sm:$0xf] }
 0x117   :  { %1755 = vmatpush.bf16.msrb.mxu1 %v3366_v36  ;;  %v824_v49 = vpop.f32.mrf.mxu3  ;;  %1785 = vmatpush.bf16.msrb.mxu2 %v3050_v47  ;;  %v3370_v36 = vor.u32 %v3900_v31, %v3367_v32  ;;  %v3335_v47 = vld [vmem:[#allocation8 + $0x3b8] sm:$0xf0] }
 0x118   :  { %v3844_v49 = vld [vmem:[#allocation8 + $0x22c] sm:$0xf]  ;;  %v3338_v51 = vor.u32 %v3892_v46, %v3335_v47  ;;  %v3906_v31 = vld [vmem:[#allocation11 + $0x14] sm:$0xf0]  ;;  %v3431_v46 = vld [vmem:[#allocation11 + $0x78] sm:$0xf0] }
 0x119   :  { %1747 = vmatpush.bf16.msra.mxu3 %v3158_v53  ;;  %v3888_v53 = vld [vmem:[#allocation8 + $0x38c] sm:$0xf] }
 0x11a   :  { %v3322_v56 = vor.u32 %v3888_v53, %v3319_v48  ;;  %v3950_v48 = vld [vmem:[#allocation11 + $0x174] sm:$0xf0] }
 0x11b   :  { %1756 = vmatpush.bf16.msrb.mxu1 %v3350_v50  ;;  %1786 = vmatpush.bf16.msrb.mxu2 %v3034_v57  ;;  %v3143_v50 = vld [vmem:[#allocation8 + $0x238] sm:$0xf0]  ;;  %v3130_v57 = vor.u32 %v3840_v54, %v3127_v55  ;;  %v3915_v54 = vld [vmem:[#allocation11 + $0x64] sm:$0xf]  ;;  %v3423_v55 = vld [vmem:[#allocation11 + $0x68] sm:$0xf0] }
 0x11c   :  { %v3146_v52 = vor.u32 %v3844_v49, %v3143_v50  ;;  %v3461_v50 = vld [vmem:[#allocation11 + $0xb0] sm:$0xf] }
 0x11d   :  { %1748 = vmatpush.bf16.msra.mxu3 %v3142_v62  ;;  %v3880_v62 = vld [vmem:[#allocation8 + $0x34c] sm:$0xf] }
 0x11e   :  { %v3290_v45 = vor.u32 %v3880_v62, %v3287_v0  ;;  %v3924_v62 = vld [vmem:[#allocation11 + $0xa4] sm:$0xf0]  ;;  %v3549_v0 = vld [vmem:[#allocation11 + $0x160] sm:$0xf] }
 0x11f   :  { %1757 = vmatpush.bf16.msrb.mxu1 %v3334_v58  ;;  %1787 = vmatpush.bf16.msrb.mxu2 %v3018_v4  ;;  %v3884_v58 = vld [vmem:[#allocation8 + $0x36c] sm:$0xf]  ;;  %v3274_v4 = vor.u32 %v3876_v2, %v3271_v63  ;;  %v3913_v63 = vld [vmem:[#allocation11 + $0x54] sm:$0xf] }
 0x120   :  { %v3306_v61 = vor.u32 %v3884_v58, %v3303_v60  ;;  %v3948_v2 = vld [vmem:[#allocation11 + $0x164] sm:$0xf0] }
 0x121   :  { %1749 = vmatpush.bf16.msra.mxu3 %v3126_v10  ;;  %v3550_v6 = vor.u32 %v3948_v2, %v3549_v0  ;;  %v3501_v0 = vld [vmem:[#allocation11 + $0x100] sm:$0xf]  ;;  %v3621_v2 = vld [vmem:[#allocation11 + $0x1f0] sm:$0xf] }
 0x123   :  { %1758 = vmatpush.bf16.msrb.mxu1 %v3318_v8  ;;  %1788 = vmatpush.bf16.msrb.mxu2 %v3002_v1  ;;  %v3872_v8 = vld [vmem:[#allocation8 + $0x30c] sm:$0xf]  ;;  %v3413_v1 = vld [vmem:[#allocation11 + $0x50] sm:$0xf] }
 0x124   :  { %1750 = vmatmul.bf16.vlgmr.msra.gmra.mxu3 %v4336_v3  ;;  %v3258_v10 = vor.u32 %v3872_v8, %v3255_v9  ;;  %v3414_v15 = vor.u32 %v3914_v14, %v3413_v1  ;;  %v3445_v8 = vld [vmem:[#allocation11 + $0x90] sm:$0xf]  ;;  %v3922_v9 = vld [vmem:[#allocation11 + $0x94] sm:$0xf0] }
 0x125   :  { %1794 = vmatpush.bf16.msrb.mxu3 %v3242_v13  ;;  %v3916_v13 = vld [vmem:[#allocation11 + $0x64] sm:$0xf0] }
 0x126   :  { %1711 = vmatmul.bf16.vlgmr.msra.gmra.mxu1 %v4341_v39  ;;  %1789 = vmatmul.bf16.vlgmr.msrb.gmra.mxu2 %v4325_v59  ;;  %v3896_v59 = vld [vmem:[#allocation8 + $0x3cc] sm:$0xf] }
 0x127   :  { %1759 = vmatpush.bf16.msrb.mxu1 %v3302_v16  ;;  %v3354_v43 = vor.u32 %v3896_v59, %v3351_v38  ;;  %v3373_v59 = vld [vmem:[#allocation11] sm:$0xf]  ;;  %v3904_v38 = vld [vmem:[#allocation11 + $0x4] sm:$0xf0] }
 0x128   :  { %v3374_v41 = vor.u32 %v3904_v38, %v3373_v59  ;;  %v3517_v59 = vld [vmem:[#allocation11 + $0x120] sm:$0xf]  ;;  %v3940_v38 = vld [vmem:[#allocation11 + $0x124] sm:$0xf0] }
 0x129   :  { %1795 = vmatpush.bf16.msrb.mxu3 %v3226_v19  ;;  %v3397_v19 = vld [vmem:[#allocation11 + $0x30] sm:$0xf] }
 0x12b   :  { %1760 = vmatpush.bf16.msrb.mxu1 %v3286_v42  ;;  %v3493_v42 = vld [vmem:[#allocation11 + $0xf0] sm:$0xf] }
 0x12c   :  { %v3494_v23 = vor.u32 %v3934_v22, %v3493_v42  ;;  %v3909_v42 = vld [vmem:[#allocation11 + $0x34] sm:$0xf]  ;;  %v3399_v22 = vld [vmem:[#allocation11 + $0x38] sm:$0xf0] }
 0x12d   :  { %1796 = vmatpush.bf16.msrb.mxu3 %v3210_v24  ;;  %v3398_v24 = vor.u32 %v3910_v21, %v3397_v19  ;;  %v3533_v19 = vld [vmem:[#allocation11 + $0x140] sm:$0xf]  ;;  %v3944_v21 = vld [vmem:[#allocation11 + $0x144] sm:$0xf0] }
 0x12e   :  { %2231 = vmatpush.bf16.msra.mxu2 %v3494_v23  ;;  %v3534_v23 = vor.u32 %v3944_v21, %v3533_v19  ;;  %v3947_v19 = vld [vmem:[#allocation11 + $0x164] sm:$0xf] }
 0x12f   :  { %1761 = vmatpush.bf16.msrb.mxu1 %v3270_v27  ;;  %v3485_v27 = vld [vmem:[#allocation11 + $0xe0] sm:$0xf] }
 0x130   :  { %v3486_v32 = vor.u32 %v3932_v29, %v3485_v27  ;;  %v3942_v29 = vld [vmem:[#allocation11 + $0x134] sm:$0xf0] }
 0x131   :  { %1797 = vmatpush.bf16.msrb.mxu3 %v3194_v30  ;;  %v3381_v30 = vld [vmem:[#allocation11 + $0x10] sm:$0xf] }
 0x132   :  { %2232 = vmatpush.bf16.msra.mxu2 %v3486_v32  ;;  %v3391_v32 = vld [vmem:[#allocation11 + $0x28] sm:$0xf0] }
 0x133   :  { %1762 = vmatpush.bf16.msrb.mxu1 %v3254_v35  ;;  %v3382_v35 = vor.u32 %v3906_v31, %v3381_v30  ;;  %v3907_v30 = vld [vmem:[#allocation11 + $0x24] sm:$0xf] }
 0x135   :  { %1798 = vmatpush.bf16.msrb.mxu3 %v3178_v37 }
 0x136   :  { %1763 = vmatmul.bf16.vlgmr.msrb.gmra.mxu1 %v4341_v39 }
 0x137   :  { %1807 = vmatpush.bf16.msra.mxu1 %v3370_v36  ;;  %v3478_v36 = vor.u32 %v3930_v34, %v3477_v33  ;;  %v3931_v33 = vld [vmem:[#allocation11 + $0xe4] sm:$0xf]  ;;  %v3487_v34 = vld [vmem:[#allocation11 + $0xe8] sm:$0xf0] }
 0x139   :  { %1799 = vmatpush.bf16.msrb.mxu3 %v3162_v44  ;;  %2233 = vmatpush.bf16.msra.mxu2 %v3478_v36  ;;  %v3917_v44 = vld [vmem:[#allocation11 + $0x74] sm:$0xf]  ;;  %v3490_v36 = vor.u32 %v3931_v33, %v3487_v34 }
 0x13a   :  { %v3434_v49 = vor.u32 %v3917_v44, %v3431_v46  ;;  %v3929_v44 = vld [vmem:[#allocation11 + $0xd4] sm:$0xf] }
 0x13b   :  { %1808 = vmatpush.bf16.msra.mxu1 %v3354_v43  ;;  %v3928_v43 = vld [vmem:[#allocation11 + $0xc4] sm:$0xf0] }
 0x13c   :  { %v3470_v47 = vor.u32 %v3928_v43, %v3469_v40  ;;  %v3518_v40 = vor.u32 %v3940_v38, %v3517_v59  ;;  %v3383_v43 = vld [vmem:[#allocation11 + $0x18] sm:$0xf0]  ;;  %v3597_v59 = vld [vmem:[#allocation11 + $0x1c0] sm:$0xf]  ;;  %v3960_v38 = vld [vmem:[#allocation11 + $0x1c4] sm:$0xf0] }
 0x13d   :  { %1800 = vmatpush.bf16.msrb.mxu3 %v3146_v52  ;;  %v3557_v52 = vld [vmem:[#allocation11 + $0x170] sm:$0xf] }
 0x13e   :  { %2234 = vmatpush.bf16.msra.mxu2 %v3470_v47  ;;  %v3479_v47 = vld [vmem:[#allocation11 + $0xd8] sm:$0xf0] }
 0x13f   :  { %1809 = vmatpush.bf16.msra.mxu1 %v3338_v51  ;;  %v3926_v51 = vld [vmem:[#allocation11 + $0xb4] sm:$0xf0] }
 0x140   :  { %v3462_v53 = vor.u32 %v3926_v51, %v3461_v50  ;;  %v3509_v50 = vld [vmem:[#allocation11 + $0x110] sm:$0xf]  ;;  %v3938_v51 = vld [vmem:[#allocation11 + $0x114] sm:$0xf0] }
 0x141   :  { %1801 = vmatpush.bf16.msrb.mxu3 %v3130_v57  ;;  %v3426_v57 = vor.u32 %v3915_v54, %v3423_v55  ;;  %v3927_v54 = vld [vmem:[#allocation11 + $0xc4] sm:$0xf] }
 0x142   :  { %2235 = vmatpush.bf16.msra.mxu2 %v3462_v53  ;;  %v3903_v53 = vld [vmem:[#allocation11 + $0x4] sm:$0xf] }
 0x143   :  { %1810 = vmatpush.bf16.msra.mxu1 %v3322_v56  ;;  %v3558_v56 = vor.u32 %v3950_v48, %v3557_v52  ;;  %v3510_v52 = vor.u32 %v3938_v51, %v3509_v50  ;;  %v3375_v48 = vld [vmem:[#allocation11 + $0x8] sm:$0xf0] }
 0x144   :  { %1802 = vmatmul.bf16.vlgmr.msrb.gmra.mxu3 %v4336_v3  ;;  %v3422_v3 = vor.u32 %v3916_v13, %v3421_v12  ;;  %v3946_v12 = vld [vmem:[#allocation11 + $0x154] sm:$0xf0]  ;;  %v3911_v13 = vld [vmem:[#allocation11 + $0x44] sm:$0xf]  ;;  %v3378_v55 = vor.u32 %v3903_v53, %v3375_v48  ;;  %v3589_v53 = vld [vmem:[#allocation11 + $0x1b0] sm:$0xf] }
 0x145   :  { %2244 = vmatpush.bf16.msra.mxu3 %v3558_v56  ;;  %v3542_v1 = vor.u32 %v3946_v12, %v3541_v5  ;;  %v3471_v56 = vld [vmem:[#allocation11 + $0xc8] sm:$0xf0]  ;;  %v3949_v12 = vld [vmem:[#allocation11 + $0x174] sm:$0xf]  ;;  %v3958_v48 = vld [vmem:[#allocation11 + $0x1b4] sm:$0xf0] }
 0x146   :  { %2219 = vmatpush.bf16.msrb.mxu0 %v3422_v3  ;;  %v3407_v3 = vld [vmem:[#allocation11 + $0x48] sm:$0xf0] }
 0x147   :  { %1811 = vmatpush.bf16.msra.mxu1 %v3306_v61  ;;  %v4350_v11 = vpop.f32.mrf.mxu0  ;;  %v3453_v61 = vld [vmem:[#allocation11 + $0xa0] sm:$0xf]  ;;  %v3410_v14 = vor.u32 %v3911_v13, %v3407_v3  ;;  %v3559_v13 = vld [vmem:[#allocation11 + $0x178] sm:$0xf0] }
 0x148   :  { %v3562_v3 = vor.u32 %v3949_v12, %v3559_v13  ;;  %v3937_v12 = vld [vmem:[#allocation11 + $0x114] sm:$0xf]  ;;  %v3511_v13 = vld [vmem:[#allocation11 + $0x118] sm:$0xf0] }
 0x149   :  { %2245 = vmatpush.bf16.msra.mxu3 %v3550_v6  ;;  %v3925_v6 = vld [vmem:[#allocation11 + $0xb4] sm:$0xf] }
 0x14a   :  { %2220 = vmatpush.bf16.msrb.mxu0 %v3414_v15 }
 0x14b   :  { %1812 = vmatpush.bf16.msra.mxu1 %v3290_v45  ;;  %v3454_v45 = vor.u32 %v3924_v62, %v3453_v61  ;;  %v3474_v62 = vor.u32 %v3927_v54, %v3471_v56  ;;  %v3590_v54 = vor.u32 %v3958_v48, %v3589_v53  ;;  %v3527_v56 = vld [vmem:[#allocation11 + $0x138] sm:$0xf0] }
 0x14d   :  { %2236 = vmatpush.bf16.msra.mxu2 %v3454_v45  ;;  %2246 = vmatpush.bf16.msra.mxu3 %v3542_v1  ;;  %v3936_v45 = vld [vmem:[#allocation11 + $0x104] sm:$0xf0]  ;;  %v3613_v1 = vld [vmem:[#allocation11 + $0x1e0] sm:$0xf] }
 0x14e   :  { %2221 = vmatpush.bf16.msrb.mxu0 %v3406_v20  ;;  %v3438_v20 = vor.u32 %v3920_v18, %v3437_v17  ;;  %v3923_v17 = vld [vmem:[#allocation11 + $0xa4] sm:$0xf]  ;;  %v3455_v18 = vld [vmem:[#allocation11 + $0xa8] sm:$0xf0] }
 0x14f   :  { %1813 = vmatpush.bf16.msra.mxu1 %v3274_v4  ;;  %v1623_v16 = vpop.f32.mrf.mxu0  ;;  %v3415_v4 = vld [vmem:[#allocation11 + $0x58] sm:$0xf0]  ;;  %v3458_v21 = vor.u32 %v3923_v17, %v3455_v18 }
 0x150   :  { %v3418_v7 = vor.u32 %v3913_v63, %v3415_v4  ;;  %v3502_v63 = vor.u32 %v3936_v45, %v3501_v0  ;;  %v3966_v4 = vld [vmem:[#allocation11 + $0x1f4] sm:$0xf0] }
 0x151   :  { %2247 = vmatpush.bf16.msra.mxu3 %v3534_v23  ;;  %v3622_v5 = vor.u32 %v3966_v4, %v3621_v2  ;;  %v3581_v2 = vld [vmem:[#allocation11 + $0x1a0] sm:$0xf]  ;;  %v3939_v4 = vld [vmem:[#allocation11 + $0x124] sm:$0xf] }
 0x152   :  { %2222 = vmatpush.bf16.msrb.mxu0 %v3398_v24  ;;  %v3402_v24 = vor.u32 %v3909_v42, %v3399_v22  ;;  %v3551_v42 = vld [vmem:[#allocation11 + $0x168] sm:$0xf0] }
 0x153   :  { %1814 = vmatpush.bf16.msra.mxu1 %v3258_v10  ;;  %v3446_v10 = vor.u32 %v3922_v9, %v3445_v8  ;;  %v3554_v23 = vor.u32 %v3947_v19, %v3551_v42 }
 0x155   :  { %2237 = vmatpush.bf16.msra.mxu2 %v3446_v10 }
 0x156   :  { %1815 = vmatmul.bf16.vlgmr.msra.gmra.mxu1 %v4341_v39  ;;  %v3908_v39 = vld [vmem:[#allocation11 + $0x24] sm:$0xf0] }
 0x157   :  { %v4353_v25 = vpop.f32.mrf.mxu0  ;;  %v3390_v28 = vor.u32 %v3908_v39, %v3389_v26  ;;  %v3933_v26 = vld [vmem:[#allocation11 + $0xf4] sm:$0xf]  ;;  %v3495_v39 = vld [vmem:[#allocation11 + $0xf8] sm:$0xf0]  ;;  %2257 = vmatpush.bf16.msrb.mxu1 %v3622_v5  ;;  %v3954_v5 = vld [vmem:[#allocation11 + $0x194] sm:$0xf0] }
 0x158   :  { %v3498_v27 = vor.u32 %v3933_v26, %v3495_v39  ;;  %v3605_v26 = vld [vmem:[#allocation11 + $0x1d0] sm:$0xf]  ;;  %v3962_v39 = vld [vmem:[#allocation11 + $0x1d4] sm:$0xf0] }
 0x159   :  { %2223 = vmatpush.bf16.msrb.mxu0 %v3390_v28  ;;  %v3525_v28 = vld [vmem:[#allocation11 + $0x130] sm:$0xf]  ;;  %2238 = vmatpush.bf16.msra.mxu2 %v3438_v20 }
 0x15a   :  { %v3526_v31 = vor.u32 %v3942_v29, %v3525_v28  ;;  %v3921_v28 = vld [vmem:[#allocation11 + $0x94] sm:$0xf]  ;;  %v3447_v29 = vld [vmem:[#allocation11 + $0x98] sm:$0xf0] }
 0x15b   :  { %v3450_v33 = vor.u32 %v3921_v28, %v3447_v29  ;;  %v3963_v29 = vld [vmem:[#allocation11 + $0x1e4] sm:$0xf] }
 0x15c   :  { %2248 = vmatpush.bf16.msra.mxu3 %v3526_v31 }
 0x15d   :  { %2224 = vmatpush.bf16.msrb.mxu0 %v3382_v35  ;;  %2283 = vmatpush.bf16.msrb.mxu2 %v3498_v27  ;;  %v3394_v35 = vor.u32 %v3907_v30, %v3391_v32  ;;  %v3606_v27 = vor.u32 %v3962_v39, %v3605_v26  ;;  %v3945_v30 = vld [vmem:[#allocation11 + $0x154] sm:$0xf] }
 0x15f   :  { %v1675_v37 = vpop.f32.mrf.mxu0 }
 0x160   :  { %2249 = vmatpush.bf16.msra.mxu3 %v3518_v40  ;;  %v3598_v40 = vor.u32 %v3960_v38, %v3597_v59 }
 0x161   :  { %2225 = vmatpush.bf16.msrb.mxu0 %v3374_v41  ;;  %2284 = vmatpush.bf16.msrb.mxu2 %v3490_v36  ;;  %v3905_v41 = vld [vmem:[#allocation11 + $0x14] sm:$0xf] }
 0x162   :  { %v3386_v46 = vor.u32 %v3905_v41, %v3383_v43  ;;  %v3919_v41 = vld [vmem:[#allocation11 + $0x84] sm:$0xf]  ;;  %v3439_v43 = vld [vmem:[#allocation11 + $0x88] sm:$0xf0] }
 0x164   :  { %2250 = vmatpush.bf16.msra.mxu3 %v3510_v52 }
 0x165   :  { %2270 = vmatpush.bf16.msra.mxu0 %v3434_v49  ;;  %v3482_v49 = vor.u32 %v3929_v44, %v3479_v47  ;;  %v3943_v44 = vld [vmem:[#allocation11 + $0x144] sm:$0xf]  ;;  %v3442_v47 = vor.u32 %v3919_v41, %v3439_v43  ;;  %v3599_v41 = vld [vmem:[#allocation11 + $0x1c8] sm:$0xf0] }
 0x167   :  { %v4357_v60 = vpop.f32.mrf.mxu0  ;;  %2285 = vmatpush.bf16.msrb.mxu2 %v3482_v49  ;;  %v3535_v49 = vld [vmem:[#allocation11 + $0x148] sm:$0xf0] }
 0x168   :  { %2251 = vmatpush.bf16.msra.mxu3 %v3502_v63  ;;  %v3538_v51 = vor.u32 %v3943_v44, %v3535_v49  ;;  %v3956_v63 = vld [vmem:[#allocation11 + $0x1a4] sm:$0xf0] }
 0x169   :  { %v4355_v58 = vpop.f32.mrf.mxu2  ;;  %2271 = vmatpush.bf16.msra.mxu0 %v3426_v57  ;;  %v4361_v57 = vld [vmem:[#allocation10] sm:$0xf] }
 0x16a   :  { %v964_v8 = vperm.slane %v4361_v57, 0 }
 0x16b   :  { %2286 = vmatpush.bf16.msrb.mxu2 %v3474_v62 }
 0x16c   :  { %2296 = vmatpush.bf16.msrb.mxu3 %v3562_v3  ;;  %v1622_v20 = vadd.f32 %v4350_v11, %v964_v8  ;;  %v3543_v11 = vld [vmem:[#allocation11 + $0x158] sm:$0xf0] }
 0x16d   :  { %2272 = vmatpush.bf16.msra.mxu0 %v3418_v7  ;;  %v3463_v7 = vld [vmem:[#allocation11 + $0xb8] sm:$0xf0] }
 0x16e   :  { %v3466_v10 = vor.u32 %v3925_v6, %v3463_v7  ;;  %v3582_v6 = vor.u32 %v3956_v63, %v3581_v2  ;;  %v3519_v7 = vld [vmem:[#allocation11 + $0x128] sm:$0xf0] }
 0x16f   :  { %v1727_v16 = vpop.f32.mrf.mxu0  ;;  %v3522_v8 = vor.u32 %v3939_v4, %v3519_v7  ;;  %v3567_v2 = vld [vmem:[#allocation11 + $0x188] sm:$0xf0]  ;;  %v967_v4 = vperm.slane %v4361_v57, 3 }
 0x170   :  { %2287 = vmatpush.bf16.msrb.mxu2 %v3466_v10  ;;  %2297 = vmatpush.bf16.msrb.mxu3 %v3554_v23  ;;  %v3935_v23 = vld [vmem:[#allocation11 + $0x104] sm:$0xf] }
 0x171   :  { %v1636_v15 = vpop.f32.mrf.mxu2  ;;  %2273 = vmatpush.bf16.msra.mxu0 %v3410_v14  ;;  %v3964_v14 = vld [vmem:[#allocation11 + $0x1e4] sm:$0xf0] }
 0x172   :  { %v3614_v16 = vor.u32 %v3964_v14, %v3613_v1  ;;  %v3514_v14 = vor.u32 %v3937_v12, %v3511_v13 }
 0x174   :  { %2258 = vmatpush.bf16.msrb.mxu1 %v3614_v16  ;;  %2288 = vmatpush.bf16.msrb.mxu2 %v3458_v21  ;;  %v3952_v21 = vld [vmem:[#allocation11 + $0x184] sm:$0xf0] }
 0x175   :  { %2274 = vmatpush.bf16.msra.mxu0 %v3402_v24  ;;  %v1635_v24 = vadd.f32 %v4355_v58, %v1622_v20  ;;  %v3565_v20 = vld [vmem:[#allocation11 + $0x180] sm:$0xf] }
 0x176   :  { %v3566_v42 = vor.u32 %v3952_v21, %v3565_v20  ;;  %v3970_v21 = vld [vmem:[#allocation13 + $0x18] sm:$0xff] }
 0x178   :  { %2259 = vmatpush.bf16.msrb.mxu1 %v3606_v27  ;;  %2289 = vmatpush.bf16.msrb.mxu2 %v3450_v33  ;;  %v3623_v27 = vld [vmem:[#allocation11 + $0x1f8] sm:$0xf0] }
 0x179   :  { %v4359_v37 = vpop.f32.mrf.mxu2  ;;  %2275 = vmatpush.bf16.msra.mxu0 %v3394_v35  ;;  %v3546_v35 = vor.u32 %v3945_v30, %v3543_v11  ;;  %v3615_v30 = vld [vmem:[#allocation11 + $0x1e8] sm:$0xf0] }
 0x17a   :  { %v3618_v33 = vor.u32 %v3963_v29, %v3615_v30  ;;  %v3978_v29 = vld [vmem:[#allocation13 + $0x58] sm:$0xff]  ;;  %v3977_v30 = vld [vmem:[#allocation13 + $0x50] sm:$0xff] }
 0x17b   :  { %2298 = vmatpush.bf16.msrb.mxu3 %v3546_v35  ;;  %v3961_v35 = vld [vmem:[#allocation11 + $0x1d4] sm:$0xf] }
 0x17c   :  { %2260 = vmatpush.bf16.msrb.mxu1 %v3598_v40  ;;  %2290 = vmatpush.bf16.msrb.mxu2 %v3442_v47  ;;  %v3959_v40 = vld [vmem:[#allocation11 + $0x1c4] sm:$0xf] }
 0x17d   :  { %2276 = vmatpush.bf16.msra.mxu0 %v3386_v46 }
 0x17f   :  { %2299 = vmatpush.bf16.msrb.mxu3 %v3538_v51  ;;  %v3957_v51 = vld [vmem:[#allocation11 + $0x1b4] sm:$0xf] }
 0x180   :  { %2261 = vmatpush.bf16.msrb.mxu1 %v3590_v54 }
 0x181   :  { %v1688_v61 = vpop.f32.mrf.mxu2  ;;  %2277 = vmatpush.bf16.msra.mxu0 %v3378_v55  ;;  %v3941_v55 = vld [vmem:[#allocation11 + $0x134] sm:$0xf] }
 0x182   :  { %v965_v61 = vperm.slane %v4361_v57, 1  ;;  %v3530_v0 = vor.u32 %v3941_v55, %v3527_v56  ;;  %v3955_v55 = vld [vmem:[#allocation11 + $0x1a4] sm:$0xf] }
 0x184   :  { %2300 = vmatpush.bf16.msrb.mxu3 %v3530_v0  ;;  %v1674_v10 = vadd.f32 %v4353_v25, %v965_v61  ;;  %2262 = vmatpush.bf16.msrb.mxu1 %v3582_v6  ;;  %v3965_v25 = vld [vmem:[#allocation11 + $0x1f4] sm:$0xf]  ;;  %v3575_v61 = vld [vmem:[#allocation11 + $0x198] sm:$0xf0] }
 0x186   :  { %v1687_v3 = vadd.f32 %v4359_v37, %v1674_v10  ;;  %v3626_v37 = vor.u32 %v3965_v25, %v3623_v27 }
 0x187   :  { %v1647_v9 = vpop.f32.mrf.mxu3  ;;  %v4364_v15 = vpop.f32.mrf.mxu0 }
 0x188   :  { %v1648_v31 = vadd.f32 %v1647_v9, %v1635_v24  ;;  %v3573_v9 = vld [vmem:[#allocation11 + $0x190] sm:$0xf]  ;;  %2301 = vmatpush.bf16.msrb.mxu3 %v3522_v8  ;;  %v3503_v24 = vld [vmem:[#allocation11 + $0x108] sm:$0xf0]  ;;  %v1778_v7 = vadd.f32 %v4364_v15, %v967_v4  ;;  %v3982_v15 = vld [vmem:[#allocation13 + $0x78] sm:$0xff] }
 0x189   :  { %v4367_v22 = vpop.f32.mrf.mxu2  ;;  %v3574_v1 = vor.u32 %v3954_v5, %v3573_v9  ;;  %v3506_v39 = vor.u32 %v3935_v23, %v3503_v24  ;;  %v3969_v23 = vld [vmem:[#allocation13 + $0x10] sm:$0xff] }
 0x18a   :  { %v3981_v24 = vld [vmem:[#allocation13 + $0x70] sm:$0xff] }
 0x18b   :  { %2263 = vmatpush.bf16.msrb.mxu1 %v3574_v1 }
 0x18c   :  { %2302 = vmatpush.bf16.msrb.mxu3 %v3514_v14  ;;  %v3974_v14 = vld [vmem:[#allocation13 + $0x38] sm:$0xff] }
 0x18f   :  { %v1649_v32 = vpop.f32.mrf.mxu3  ;;  %v1779_v58 = vpop.f32.mrf.mxu0  ;;  %2264 = vmatpush.bf16.msrb.mxu1 %v3566_v42 }
 0x190   :  { %2303 = vmatpush.bf16.msrb.mxu3 %v3506_v39  ;;  %v3980_v39 = vld [vmem:[#allocation13 + $0x68] sm:$0xff] }
 0x191   :  { %v1740_v50 = vpop.f32.mrf.mxu2 }
 0x193   :  { %v1660_v34 = vpop.f32.mrf.mxu1  ;;  %2309 = vmatpush.bf16.msra.mxu1 %v3626_v37  ;;  %v3967_v37 = vld [vmem:[#allocation13] sm:$0xff] }
 0x194   :  { %v1661_v36 = vadd.f32 %v1660_v34, %v1648_v31  ;;  %v966_v31 = vperm.slane %v4361_v57, 2  ;;  %v3972_v57 = vld [vmem:[#allocation13 + $0x28] sm:$0xff] }
 0x196   :  { %v1820_v46 = vmax.f32 %v1661_v36, 0.0  ;;  %v3607_v36 = vld [vmem:[#allocation11 + $0x1d8] sm:$0xf0]  ;;  %v1726_v59 = vadd.f32 %v4357_v60, %v966_v31  ;;  %v3583_v60 = vld [vmem:[#allocation11 + $0x1a8] sm:$0xf0] }
 0x197   :  { %v1699_v62 = vpop.f32.mrf.mxu3  ;;  %2310 = vmatpush.bf16.msra.mxu1 %v3618_v33  ;;  %v3610_v38 = vor.u32 %v3961_v35, %v3607_v36  ;;  %v3586_v56 = vor.u32 %v3955_v55, %v3583_v60  ;;  %v3976_v33 = vld [vmem:[#allocation13 + $0x48] sm:$0xff]  ;;  %v3975_v35 = vld [vmem:[#allocation13 + $0x40] sm:$0xff] }
 0x198   :  { %v1824_v52 = vpack.c.bf16 %v1820_v46, %v1820_v46  ;;  %v1700_v16 = vadd.f32 %v1699_v62, %v1687_v3  ;;  %v1739_v58 = vadd.f32 %v4367_v22, %v1726_v59  ;;  %v3602_v46 = vor.u32 %v3959_v40, %v3599_v41  ;;  %v3953_v22 = vld [vmem:[#allocation11 + $0x194] sm:$0xf]  ;;  %v1892_v36 = vld [vmem:[%s4393_s6] sm:$0x3] }
 0x199   :  { %v3578_v0 = vor.u32 %v3953_v22, %v3575_v61  ;;  %v1894_v59 = vperm.slane %v1892_v36, 0 }
 0x19a   :  { %2226 = vmatmul.bf16.vlgmr.msrb.gmra.mxu0 %v1824_v52 }
 0x19b   :  { %v1662_v45 = vpop.f32.mrf.mxu1  ;;  %2311 = vmatpush.bf16.msra.mxu1 %v3610_v38  ;;  %2458 = vmatpush.bf16.msrb.mxu0 %v3974_v14 }
 0x19c   :  { %v3951_v45 = vld [vmem:[#allocation11 + $0x184] sm:$0xf] }
 0x19d   :  { %v3570_v63 = vor.u32 %v3951_v45, %v3567_v2  ;;  %v3997_v45 = vld [vmem:[%s4395_s8] ss:$0 sm:$0xff] }
 0x19f   :  { %v1701_v17 = vpop.f32.mrf.mxu3  ;;  %2312 = vmatpush.bf16.msra.mxu1 %v3602_v46 }
 0x1a0   :  { %v3973_v17 = vld [vmem:[#allocation13 + $0x30] sm:$0xff] }
 0x1a1   :  { %2459 = vmatpush.bf16.msrb.mxu0 %v3973_v17 }
 0x1a3   :  { %v1712_v18 = vpop.f32.mrf.mxu1 }
 0x1a4   :  { %v1713_v19 = vadd.f32 %v1712_v18, %v1700_v16 }
 0x1a5   :  { %2460 = vmatpush.bf16.msrb.mxu0 %v3972_v57 }
 0x1a6   :  { %v1821_v26 = vmax.f32 %v1713_v19, 0.0  ;;  %v3971_v19 = vld [vmem:[#allocation13 + $0x20] sm:$0xff] }
 0x1a7   :  { %v1751_v32 = vpop.f32.mrf.mxu3 }
 0x1a8   :  { %v1825_v28 = vpack.c.bf16 %v1821_v26, %v1821_v26  ;;  %v1752_v43 = vadd.f32 %v1751_v32, %v1739_v58  ;;  %v3968_v26 = vld [vmem:[#allocation13 + $0x8] sm:$0xff] }
 0x1a9   :  { %v1790_v34 = vpop.f32.mrf.mxu2  ;;  %2461 = vmatpush.bf16.msrb.mxu0 %v3971_v19 }
 0x1aa   :  { %2239 = vmatmul.bf16.vlgmr.msra.gmra.mxu2 %v1825_v28  ;;  %2278 = vmatmul.bf16.vlgmr.msra.gmra.mxu0 %v1824_v52  ;;  %v3591_v52 = vld [vmem:[#allocation11 + $0x1b8] sm:$0xf0]  ;;  %v1791_v8 = vadd.f32 %v1790_v34, %v1778_v7 }
 0x1ab   :  { %v1714_v11 = vpop.f32.mrf.mxu1  ;;  %v3594_v48 = vor.u32 %v3957_v51, %v3591_v52  ;;  %2471 = vmatpush.bf16.msra.mxu2 %v3982_v15 }
 0x1ad   :  { %2313 = vmatpush.bf16.msra.mxu1 %v3594_v48  ;;  %2462 = vmatpush.bf16.msrb.mxu0 %v3970_v21 }
 0x1af   :  { %v1753_v44 = vpop.f32.mrf.mxu3  ;;  %2472 = vmatpush.bf16.msra.mxu2 %v3981_v24 }
 0x1b1   :  { %v1792_v50 = vpop.f32.mrf.mxu2  ;;  %2314 = vmatpush.bf16.msra.mxu1 %v3586_v56  ;;  %2463 = vmatpush.bf16.msrb.mxu0 %v3969_v23 }
 0x1b2   :  { %v1895_v50 = vperm.slane %v1892_v36, 1 }
 0x1b3   :  { %v1764_v47 = vpop.f32.mrf.mxu1  ;;  %2473 = vmatpush.bf16.msra.mxu2 %v3980_v39 }
 0x1b4   :  { %v1765_v49 = vadd.f32 %v1764_v47, %v1752_v43 }
 0x1b5   :  { %2315 = vmatpush.bf16.msra.mxu1 %v3578_v0  ;;  %2464 = vmatpush.bf16.msrb.mxu0 %v3968_v26  ;;  %v2484_v0 = vlaneseq }
 0x1b6   :  { %v1822_v53 = vmax.f32 %v1765_v49, 0.0 }
 0x1b7   :  { %v2485_v2 = vand.u32 127, %v2484_v0 }
 0x1b8   :  { %v1826_v54 = vpack.c.bf16 %v1822_v53, %v1822_v53 }
 0x1b9   :  { %2316 = vmatpush.bf16.msra.mxu1 %v3570_v63  ;;  %2465 = vmatpush.bf16.msrb.mxu0 %v3967_v37  ;;  %vm2486_vm2 = vcmp.lt.s32.totalorder %v2485_v2, 3 }
 0x1ba   :  { %2252 = vmatmul.bf16.vlgmr.msra.gmra.mxu3 %v1826_v54  ;;  %2291 = vmatmul.bf16.vlgmr.msrb.gmra.mxu2 %v1825_v28  ;;  %v3979_v28 = vld [vmem:[#allocation13 + $0x60] sm:$0xff] }
 0x1bb   :  { %v1766_v62 = vpop.f32.mrf.mxu1  ;;  %2474 = vmatpush.bf16.msra.mxu2 %v3979_v28 }
 0x1bf   :  { %2475 = vmatpush.bf16.msra.mxu2 %v3978_v29 }
 0x1c3   :  { %2476 = vmatpush.bf16.msra.mxu2 %v3977_v30 }
 0x1c7   :  { %v1803_v6 = vpop.f32.mrf.mxu3  ;;  %2477 = vmatpush.bf16.msra.mxu2 %v3976_v33 }
 0x1c8   :  { %v1804_v9 = vadd.f32 %v1803_v6, %v1791_v8 }
 0x1ca   :  { %2304 = vmatmul.bf16.vlgmr.msrb.gmra.mxu3 %v1826_v54 }
 0x1cb   :  { %2478 = vmatpush.bf16.msra.mxu2 %v3975_v35 }
 0x1cf   :  { %v1805_v5 = vpop.f32.mrf.mxu3 }
 0x1d3   :  { %v1816_v10 = vpop.f32.mrf.mxu1 }
 0x1d4   :  { %v1817_v12 = vadd.f32 %v1816_v10, %v1804_v9 }
 0x1d6   :  { %v1823_v13 = vmax.f32 %v1817_v12, 0.0 }
 0x1d8   :  { %v1827_v3 = vpack.c.bf16 %v1823_v13, %v1823_v13 }
 0x1da   :  { %2265 = vmatmul.bf16.vlgmr.msrb.gmra.mxu1 %v1827_v3 }
 0x1db   :  { %v1818_v1 = vpop.f32.mrf.mxu1 }
 0x1ea   :  { %2317 = vmatmul.bf16.vlgmr.msra.gmra.mxu1 %v1827_v3 }
 0x217   :  { %v2227_v16 = vpop.f32.mrf.mxu0 }
 0x218   :  { %v2228_v58 = vadd.f32 %v2227_v16, %v1894_v59 }
 0x21f   :  { %v2229_v18 = vpop.f32.mrf.mxu0 }
 0x227   :  { %v2279_v20 = vpop.f32.mrf.mxu0 }
 0x228   :  { %v2280_v52 = vadd.f32 %v2279_v20, %v1895_v50 }
 0x22d   :  { %v2240_v42 = vpop.f32.mrf.mxu2 }
 0x22e   :  { %v2241_v40 = vadd.f32 %v2240_v42, %v2228_v58 }
 0x22f   :  { %v2281_v25 = vpop.f32.mrf.mxu0 }
 0x235   :  { %v2242_v27 = vpop.f32.mrf.mxu2 }
 0x23d   :  { %v2253_v31 = vpop.f32.mrf.mxu3  ;;  %v2292_v32 = vpop.f32.mrf.mxu2 }
 0x23e   :  { %v2254_v41 = vadd.f32 %v2253_v31, %v2241_v40  ;;  %v2293_v53 = vadd.f32 %v2292_v32, %v2280_v52 }
 0x245   :  { %v2255_v11 = vpop.f32.mrf.mxu3  ;;  %v2294_v34 = vpop.f32.mrf.mxu2 }
 0x24d   :  { %v2305_v38 = vpop.f32.mrf.mxu3 }
 0x24e   :  { %v2306_v48 = vadd.f32 %v2305_v38, %v2293_v53 }
 0x255   :  { %v2307_v46 = vpop.f32.mrf.mxu3 }
 0x257   :  { %v2266_v43 = vpop.f32.mrf.mxu1 }
 0x258   :  { %v2267_v44 = vadd.f32 %v2266_v43, %v2254_v41 }
 0x25a   :  { %v2322_v47 = vmax.f32 %v2267_v44, 0.0 }
 0x25c   :  { %v2324_v49 = vpack.c.bf16 %v2322_v47, %v2322_v47 }
 0x25e   :  { %2466 = vmatmul.bf16.vlgmr.msrb.gmra.mxu0 %v2324_v49 }
 0x25f   :  { %v2268_v51 = vpop.f32.mrf.mxu1 }
 0x267   :  { %v2318_v54 = vpop.f32.mrf.mxu1 }
 0x268   :  { %v2319_v55 = vadd.f32 %v2318_v54, %v2306_v48 }
 0x26a   :  { %v2323_v60 = vmax.f32 %v2319_v55, 0.0 }
 0x26c   :  { %v2325_v56 = vpack.c.bf16 %v2323_v60, %v2323_v60 }
 0x26e   :  { %2479 = vmatmul.bf16.vlgmr.msra.gmra.mxu2 %v2325_v56 }
 0x26f   :  { %v2320_v22 = vpop.f32.mrf.mxu1 }
 0x2db   :  { %v2467_v61 = vpop.f32.mrf.mxu0 }
 0x2dc   :  { %v2468_v63 = vadd.f32 %v3997_v45, %v2467_v61 }
 0x2e3   :  { %v2469_v62 = vpop.f32.mrf.mxu0 }
 0x2f1   :  { %v2480_v4 = vpop.f32.mrf.mxu2 }
 0x2f2   :  { %v2481_v6 = vadd.f32 %v2480_v4, %v2468_v63 }
 0x2f4   :  { %v2487_v7 = vsel %vm2486_vm2, %v2481_v6, -1e+30 }
 0x2f5   :  { %2488 = vmax.xlane.f32.xlu0 %v2487_v7 }
 0x2f9   :  { %v2482_v8 = vpop.f32.mrf.mxu2 }
 0x368   :  { %v2489_v9 = vpop.xlane.xlu0 %2488 }
 0x369   :  { %v2490_v5 = vsub.f32 %v2487_v7, %v2489_v9 }
 0x36b   :  { %v2491_v10 = vmul.f32 1.442695, %v2490_v5 }
 0x36d   :  { %3998 = vpow2.f32 %v2491_v10 }
 0x373   :  { %v3999_v12 = vpop.eup %3998 }
 0x374   :  { %2493 = vadd.xlane.f32.xlu0 %v3999_v12 }
 0x3e7   :  { %v2494_v13 = vpop.xlane.xlu0 %2493 }
 0x3e8   :  { %4000 = vlog2.f32 %v2494_v13 }
 0x3ee   :  { %v4001_v3 = vpop.eup %4000 }
 0x3ef   :  { %v2496_v1 = vmul.f32 0.6931472, %v4001_v3 }
 0x3f1   :  { %v2497_v14 = vsub.f32 %v2490_v5, %v2496_v1 }
 0x3f3   :  { %2498 = vst [vmem:[#allocation14] sm:$0xff] %v2497_v14 }
 0x3f4   :  { %2509 = dma.vmem_to_hbm [thread:$0]  %s2505_s25, 128, %s2507_s3, [#allocation4]  }
 0x3f5   :  { %4202 = dma.done.wait [#allocation4], 128  }
 0x3f6   :  { %4203 = vsyncadd [#allocation4], 4294967168 }
 0x3f7   :  { %2514 = vsyncpa [#allocation3], 1 }
 0x3f8   :  { %2515 = vsyncpa [#allocation6], 1 }
 0x3f9   :  { %2516 = vsyncpa [#allocation9], 1 }
 0x3fa   :  { %2517 = vsyncpa [#allocation12], 1 }
 0x3fb   :  { %2518 = vsyncpa [#allocation4], 1 }

</bundles_post_ra>
